<compile_context>
chip_gen: v7x
topology: tpu7x:2x2x1
jax: 0.10.0
libtpu: 0.0.40
codegen_flags: <defaults>
</compile_context>

<pallas_src>
import math

import jax
import jax.numpy as jnp
from jax.experimental import pallas as pl
from jax.experimental.pallas import tpu as pltpu

# ---- scaled-down xlm-roberta-base config (lane-dense: H and FFN multiples of 128) ----
HIDDEN = 128          # hidden_size (768 real)
NUM_HEADS = 4         # 12 real
HEAD_DIM = HIDDEN // NUM_HEADS
FFN = 4 * HIDDEN      # intermediate_size (512 here, 3072 real)
NUM_LAYERS = 2        # 12 real
VOCAB = 64
MAX_POS = 32
PAD_IDX = 1           # XLM-R padding_idx
EPS = 1e-5            # layer_norm_eps
OUTPUT_DIM = HIDDEN   # output_dim == hidden_size -> projection is nn.Identity()

# row indices inside the packed (L, 9, H) per-layer vector block
_BQ, _BK, _BV, _BO, _LN1G, _LN1B, _B2, _LN2G, _LN2B = range(9)


# ----------------------------- kernel helpers -----------------------------
def _layernorm(x, g, b):
    mu = jnp.mean(x, axis=-1, keepdims=True)
    xc = x - mu
    var = jnp.mean(xc * xc, axis=-1, keepdims=True)
    return xc * jax.lax.rsqrt(var + EPS) * g + b


def _gelu(x):
    # exact (erf-based) GELU, matching HF "gelu"
    return 0.5 * x * (1.0 + jax.lax.erf(x * (1.0 / math.sqrt(2.0))))


# ----------------------------- fused Pallas kernel -----------------------------
def encoder_kernel(emb_ref, mask_ref, embln_ref,
                   wqkv_ref, wo_ref, w1_ref, w2_ref, vecs_ref, b1_ref,
                   o_ref):
    """grid = (batch_tile, layer). One post-LN RoBERTa encoder layer per grid step.
    o_ref's block index is constant across the layer axis, so it doubles as the
    VMEM-resident residual stream (written back to HBM only once per batch tile)."""
    l = pl.program_id(1)
    BT, _, S = mask_ref.shape            # batch-tile rows, key length
    BS, H = o_ref.shape                  # BS = BT*S rows folded into the matmul M dim
    N, D = NUM_HEADS, HEAD_DIM

    # --- layer 0 only: fused embedding LayerNorm initializes the residual stream ---
    @pl.when(l == 0)
    def _():
        o_ref[...] = _layernorm(emb_ref[...], embln_ref[0:1, :], embln_ref[1:2, :])

    x = o_ref[...]                       # (BS, H) f32 residual stream
    x_bf = x.astype(jnp.bfloat16)
    vv = vecs_ref[0]                     # (9, H) packed biases / LN params

    # --- fused QKV projection: single (BS,H)x(H,3H) bf16 MXU matmul, f32 accumulation ---
    qkv = jnp.dot(x_bf, wqkv_ref[0], preferred_element_type=jnp.float32)   # (BS, 3H)
    scale = 1.0 / math.sqrt(D)
    q = (qkv[:, 0:H] + vv[_BQ:_BQ + 1]) * scale          # scale folded into q
    k = qkv[:, H:2 * H] + vv[_BK:_BK + 1]
    v = qkv[:, 2 * H:3 * H] + vv[_BV:_BV + 1]

    def split_heads(t):
        # (BS, H) f32 -> (N*BT, S, D) bf16, batched-matmul index z = head*BT + batch.
        # Pure value slices + leading-dim concat: no scratch, no masked 32-lane stores.
        parts = [t[:, h * D:(h + 1) * D].reshape(BT, S, D) for h in range(N)]
        return jnp.concatenate(parts, axis=0).astype(jnp.bfloat16)

    qh, kh, vh = split_heads(q), split_heads(k), split_heads(v)

    # --- attention: bf16 MXU matmuls batched over (head, batch), f32 accumulation ---
    s = jnp.einsum("zqd,zkd->zqk", qh, kh, preferred_element_type=jnp.float32)
    s4 = s.reshape(N, BT, S, S) + mask_ref[...]          # (BT,1,S) additive key mask
    s4 = s4 - jnp.max(s4, axis=-1, keepdims=True)
    p4 = jnp.exp(s4)
    p4 = p4 * pl.reciprocal(jnp.sum(p4, axis=-1, keepdims=True), approx=True)
    p = p4.astype(jnp.bfloat16).reshape(N * BT, S, S)
    ctx = jnp.einsum("zqk,zkd->zqd", p, vh, preferred_element_type=jnp.float32)

    # --- head merge fused into the output projection: attn = sum_h ctx_h @ wo_rows_h ---
    wo = wo_ref[0]                                       # (H, H) bf16
    attn = jnp.zeros((BS, H), jnp.float32)
    for h in range(N):
        ch = ctx[h * BT:(h + 1) * BT].reshape(BS, D).astype(jnp.bfloat16)
        attn = attn + jnp.dot(ch, wo[h * D:(h + 1) * D, :],
                              preferred_element_type=jnp.float32)
    attn = attn + vv[_BO:_BO + 1]

    h1 = _layernorm(attn + x, vv[_LN1G:_LN1G + 1], vv[_LN1B:_LN1B + 1])

    # --- feed-forward ---
    inter = _gelu(jnp.dot(h1.astype(jnp.bfloat16), w1_ref[0],
                          preferred_element_type=jnp.float32) + b1_ref[0])
    ffn = jnp.dot(inter.astype(jnp.bfloat16), w2_ref[0],
                  preferred_element_type=jnp.float32) + vv[_B2:_B2 + 1]
    o_ref[...] = _layernorm(ffn + h1, vv[_LN2G:_LN2G + 1], vv[_LN2B:_LN2B + 1])


# ----------------------------- wrapper -----------------------------
def pallas_encoder(emb, mask_add, params):
    B, S, H = emb.shape
    L = NUM_LAYERS
    BT = B                        # whole batch per block at these shapes; tile (and
    n_bt = B // BT                # megacore-shard) the batch axis when B grows

    # host-side layout packing (one-time XLA concats): fused QKV weight, packed vectors
    wqkv = jnp.concatenate([params["wq"], params["wk"], params["wv"]], axis=2)  # (L,H,3H) bf16
    vecs = jnp.concatenate([params["bq"], params["bk"], params["bv"], params["bo"],
                            params["ln1g"], params["ln1b"], params["b2"],
                            params["ln2g"], params["ln2b"]], axis=1)            # (L,9,H) f32
    emb_ln = jnp.concatenate([params["emb_ln_g"], params["emb_ln_b"]], axis=0)  # (2,H)

    emb2 = emb.reshape(B * S, H)  # lane-dense 2-D activations: batch folded into M

    def act2_map(bt, l):   return (bt, 0)
    def mask_map(bt, l):   return (bt, 0, 0)
    def const_map(bt, l):  return (0, 0)
    def layer_map(bt, l):  return (l, 0, 0)   # per-layer weights streamed once per tile

    in_specs = [
        pl.BlockSpec((BT * S, H), act2_map),        # embeddings
        pl.BlockSpec((BT, 1, S), mask_map),         # additive attention key mask
        pl.BlockSpec((2, H), const_map),            # emb LN gamma/beta (packed)
        pl.BlockSpec((1, H, 3 * H), layer_map),     # fused QKV weight
        pl.BlockSpec((1, H, H), layer_map),         # wo
        pl.BlockSpec((1, H, FFN), layer_map),       # w1
        pl.BlockSpec((1, FFN, H), layer_map),       # w2
        pl.BlockSpec((1, 9, H), layer_map),         # packed H-wide biases / LN params
        pl.BlockSpec((1, 1, FFN), layer_map),       # b1
    ]

    # advisory cost estimate for XLA's scheduler
    bs = B * S
    mm_flops_per_layer = (2 * bs * H * 3 * H             # fused QKV projection
                          + 2 * bs * H * H               # output projection
                          + 4 * NUM_HEADS * B * S * S * HEAD_DIM   # QK^T + PV
                          + 4 * bs * H * FFN)            # FFN up + down
    flops = int(L * mm_flops_per_layer)
    transcendentals = int(L * (NUM_HEADS * B * S * S + bs * FFN + 3 * bs) + bs)
    weight_bytes = sum(int(a.size) * a.dtype.itemsize
                       for a in (wqkv, params["wo"], params["w1"], params["w2"],
                                 vecs, params["b1"]))
    bytes_accessed = int(emb2.size * 4 + mask_add.size * 4 + bs * H * 4
                         + n_bt * weight_bytes + emb_ln.size * 4)

    out = pl.pallas_call(
        encoder_kernel,
        out_shape=jax.ShapeDtypeStruct((B * S, H), jnp.float32),
        grid_spec=pltpu.PrefetchScalarGridSpec(
            num_scalar_prefetch=0,
            grid=(n_bt, L),                  # layer axis innermost: residual stays in VMEM
            in_specs=in_specs,
            out_specs=pl.BlockSpec((BT * S, H), act2_map),
        ),
        compiler_params=pltpu.CompilerParams(
            dimension_semantics=("parallel", "arbitrary"),
        ),
        cost_estimate=pl.CostEstimate(flops=flops,
                                      transcendentals=transcendentals,
                                      bytes_accessed=bytes_accessed),
    )(emb2, mask_add, emb_ln, wqkv, params["wo"], params["w1"], params["w2"],
      vecs, params["b1"])
    return out.reshape(B, S, H)


def xlmr_branch_forward(input_ids, attention_mask, params):
    """Forward pass of XLMRTransformerBranch (eval mode, use_pooler=False)."""
    if attention_mask is None:
        attention_mask = jnp.ones_like(input_ids)

    # --- embedding gathers are data-dependent lookups; kept in plain JAX glue ---
    tok_mask = (input_ids != PAD_IDX).astype(jnp.int32)
    position_ids = jnp.cumsum(tok_mask, axis=1) * tok_mask + PAD_IDX
    token_type_ids = jnp.zeros_like(input_ids)
    emb = (params["word_emb"][input_ids]
           + params["pos_emb"][position_ids]
           + params["type_emb"][token_type_ids]).astype(jnp.float32)

    # HF-style additive attention mask: (1 - mask) * large_negative, shape (B, 1, S)
    mask_add = ((1.0 - attention_mask.astype(jnp.float32)) * -1e9)[:, None, :]

    x = pallas_encoder(emb, mask_add, params)
    # embedding dropout / output dropout: eval-mode identity
    # use_pooler=False -> last_hidden_state; projection = nn.Identity (output_dim == hidden)
    return x


# ----------------------------- pure-JAX reference -----------------------------
def _ref_forward(input_ids, attention_mask, params):
    # Mirrors the kernel's mixed precision (bf16 matmul inputs, f32 accumulation,
    # f32 LayerNorm / softmax math); relative to a pure-f32 HF forward the
    # differences are bf16-rounding level.
    B, S = input_ids.shape
    tok_mask = (input_ids != PAD_IDX).astype(jnp.int32)
    position_ids = jnp.cumsum(tok_mask, axis=1) * tok_mask + PAD_IDX
    emb = (params["word_emb"][input_ids]
           + params["pos_emb"][position_ids]
           + params["type_emb"][jnp.zeros_like(input_ids)]).astype(jnp.float32)

    def ln(y, g, b):
        mu = y.mean(-1, keepdims=True)
        var = ((y - mu) ** 2).mean(-1, keepdims=True)
        return (y - mu) * jax.lax.rsqrt(var + EPS) * g + b

    def mm(x, w):
        return jax.lax.dot_general(x.astype(jnp.bfloat16), w,
                                   (((x.ndim - 1,), (0,)), ((), ())),
                                   preferred_element_type=jnp.float32)

    x = ln(emb, params["emb_ln_g"], params["emb_ln_b"])
    mask_add = ((1.0 - attention_mask.astype(jnp.float32)) * -1e9)[:, None, None, :]
    scale = 1.0 / math.sqrt(HEAD_DIM)
    for l in range(NUM_LAYERS):
        q = mm(x, params["wq"][l]) + params["bq"][l]
        k = mm(x, params["wk"][l]) + params["bk"][l]
        v = mm(x, params["wv"][l]) + params["bv"][l]
        qh = q.reshape(B, S, NUM_HEADS, HEAD_DIM).transpose(0, 2, 1, 3).astype(jnp.bfloat16)
        kh = k.reshape(B, S, NUM_HEADS, HEAD_DIM).transpose(0, 2, 1, 3).astype(jnp.bfloat16)
        vh = v.reshape(B, S, NUM_HEADS, HEAD_DIM).transpose(0, 2, 1, 3).astype(jnp.bfloat16)
        s = jnp.einsum("bnqd,bnkd->bnqk", qh, kh,
                       preferred_element_type=jnp.float32) * scale + mask_add
        p = jax.nn.softmax(s, axis=-1)
        ctx = jnp.einsum("bnqk,bnkd->bnqd", p.astype(jnp.bfloat16), vh,
                         preferred_element_type=jnp.float32)
        ctx = ctx.transpose(0, 2, 1, 3).reshape(B, S, HIDDEN)
        attn = mm(ctx, params["wo"][l]) + params["bo"][l]
        h1 = ln(attn + x, params["ln1g"][l], params["ln1b"][l])
        inter = _gelu(mm(h1, params["w1"][l]) + params["b1"][l])
        ffn = mm(inter, params["w2"][l]) + params["b2"][l]
        x = ln(ffn + h1, params["ln2g"][l], params["ln2b"][l])
    return x


# ----------------------------- parameter init -----------------------------
def make_params(key):
    std = 0.02
    L = NUM_LAYERS
    keys = jax.random.split(key, 19)

    def w(k, shape):   # weight matrices stored bf16 (MXU native, half the HBM/VMEM bytes)
        return (jax.random.normal(k, shape, jnp.float32) * std).astype(jnp.bfloat16)

    def b(k, shape):   # biases / LN params stay f32
        return jax.random.normal(k, shape, jnp.float32) * std

    params = {
        "word_emb": jax.random.normal(keys[0], (VOCAB, HIDDEN), jnp.float32) * std,
        "pos_emb": jax.random.normal(keys[1], (MAX_POS, HIDDEN), jnp.float32) * std,
        "type_emb": jax.random.normal(keys[2], (1, HIDDEN), jnp.float32) * std,
        "emb_ln_g": jnp.ones((1, HIDDEN), jnp.float32),
        "emb_ln_b": jnp.zeros((1, HIDDEN), jnp.float32),
        # per-layer params stacked with a leading L dim (single fused pallas_call)
        "wq": w(keys[3], (L, HIDDEN, HIDDEN)),  "bq": b(keys[4], (L, 1, HIDDEN)),
        "wk": w(keys[5], (L, HIDDEN, HIDDEN)),  "bk": b(keys[6], (L, 1, HIDDEN)),
        "wv": w(keys[7], (L, HIDDEN, HIDDEN)),  "bv": b(keys[8], (L, 1, HIDDEN)),
        "wo": w(keys[9], (L, HIDDEN, HIDDEN)),  "bo": b(keys[10], (L, 1, HIDDEN)),
        "ln1g": jnp.ones((L, 1, HIDDEN), jnp.float32),
        "ln1b": jnp.zeros((L, 1, HIDDEN), jnp.float32),
        "w1": w(keys[11], (L, HIDDEN, FFN)),    "b1": b(keys[12], (L, 1, FFN)),
        "w2": w(keys[13], (L, FFN, HIDDEN)),    "b2": b(keys[14], (L, 1, HIDDEN)),
        "ln2g": jnp.ones((L, 1, HIDDEN), jnp.float32),
        "ln2b": jnp.zeros((L, 1, HIDDEN), jnp.float32),
    }
    return params


# TODO(synk): layer-freezing / parameter-counting / pretrained-weight loading are
#             training-time bookkeeping (requires_grad, logging) with no forward-pass
#             Pallas equivalent.

if __name__ == "__main__":
    key = jax.random.PRNGKey(0)
    k_ids, k_params = jax.random.split(key)

    B, S = 2, 8
    input_ids = jax.random.randint(k_ids, (B, S), minval=2, maxval=VOCAB, dtype=jnp.int32)
    attention_mask = jnp.ones((B, S), jnp.int32)   # forward default: torch.ones_like(input_ids)

    params = make_params(k_params)

    out = jax.block_until_ready(xlmr_branch_forward(input_ids, attention_mask, params))
    assert out.shape == (B, S, OUTPUT_DIM), out.shape

    ref = jax.block_until_ready(_ref_forward(input_ids, attention_mask, params))
    # tolerance accounts for bf16 matmul inputs + EUP approximate reciprocal in softmax
    err = float(jnp.max(jnp.abs(out - ref)))
    assert jnp.allclose(out, ref, rtol=5e-3, atol=5e-3), err

    print("KERNEL_OK")
</pallas_src>

<mosaic_0001>
module attributes {stable_mosaic.version = 11 : i64} {
  func.func @encoder_kernel(%arg0: i32, %arg1: i32, %arg2: memref<16x128xf32, #tpu.memory_space<vmem>>, %arg3: memref<2x1x8xf32, #tpu.memory_space<vmem>>, %arg4: memref<2x128xf32, #tpu.memory_space<vmem>>, %arg5: memref<1x128x384xbf16, #tpu.memory_space<vmem>>, %arg6: memref<1x128x128xbf16, #tpu.memory_space<vmem>>, %arg7: memref<1x128x512xbf16, #tpu.memory_space<vmem>>, %arg8: memref<1x512x128xbf16, #tpu.memory_space<vmem>>, %arg9: memref<1x9x128xf32, #tpu.memory_space<vmem>>, %arg10: memref<1x1x512xf32, #tpu.memory_space<vmem>>, %arg11: memref<16x128xf32, #tpu.memory_space<vmem>>) attributes {dimension_semantics = [#tpu.dimension_semantics<parallel>, #tpu.dimension_semantics<arbitrary>], iteration_bounds = array<i64: 1, 2>, scalar_prefetch = 0 : i64, scratch_operands = 0 : i64, tpu.core_type = #tpu.core_type<tc>, window_params = [{transform_indices = @transform_0, window_bounds = array<i64: 16, 128>}, {transform_indices = @transform_1, window_bounds = array<i64: 2, 1, 8>}, {pipeline_mode = #tpu.pipeline_mode<synchronous>, transform_indices = @transform_2, window_bounds = array<i64: 2, 128>}, {transform_indices = @transform_3, window_bounds = array<i64: 1, 128, 384>}, {transform_indices = @transform_4, window_bounds = array<i64: 1, 128, 128>}, {transform_indices = @transform_5, window_bounds = array<i64: 1, 128, 512>}, {transform_indices = @transform_6, window_bounds = array<i64: 1, 512, 128>}, {transform_indices = @transform_7, window_bounds = array<i64: 1, 9, 128>}, {transform_indices = @transform_8, window_bounds = array<i64: 1, 1, 512>}, {transform_indices = @transform_9, window_bounds = array<i64: 16, 128>}]} {
    %c0_i32 = arith.constant 0 : i32
    %0 = arith.cmpi eq, %arg1, %c0_i32 : i32
    %1 = arith.extui %0 : i1 to i32
    %c0_i32_0 = arith.constant 0 : i32
    %2 = arith.cmpi ne, %1, %c0_i32_0 : i32
    scf.if %2 {
      %c0_50 = arith.constant 0 : index
      %c0_51 = arith.constant 0 : index
      %173 = vector.load %arg2[%c0_50, %c0_51] : memref<16x128xf32, #tpu.memory_space<vmem>>, vector<16x128xf32>
      %c0_52 = arith.constant 0 : index
      %c0_53 = arith.constant 0 : index
      %174 = vector.load %arg4[%c0_52, %c0_53] : memref<2x128xf32, #tpu.memory_space<vmem>>, vector<1x128xf32>
      %c1 = arith.constant 1 : index
      %c0_54 = arith.constant 0 : index
      %175 = vector.load %arg4[%c1, %c0_54] : memref<2x128xf32, #tpu.memory_space<vmem>>, vector<1x128xf32>
      %cst_55 = arith.constant dense<0.000000e+00> : vector<16xf32>
      %176 = vector.multi_reduction <add>, %173, %cst_55 [1] : vector<16x128xf32> to vector<16xf32>
      %177 = vector.shape_cast %176 : vector<16xf32> to vector<16x1xf32>
      %cst_56 = arith.constant 1.280000e+02 : f32
      %178 = vector.broadcast %cst_56 : f32 to vector<16x1xf32>
      %179 = arith.divf %177, %178 : vector<16x1xf32>
      %180 = vector.broadcast %179 : vector<16x1xf32> to vector<16x128xf32>
      %181 = arith.subf %173, %180 : vector<16x128xf32>
      %182 = arith.mulf %181, %181 : vector<16x128xf32>
      %cst_57 = arith.constant dense<0.000000e+00> : vector<16xf32>
      %183 = vector.multi_reduction <add>, %182, %cst_57 [1] : vector<16x128xf32> to vector<16xf32>
      %184 = vector.shape_cast %183 : vector<16xf32> to vector<16x1xf32>
      %cst_58 = arith.constant 1.280000e+02 : f32
      %185 = vector.broadcast %cst_58 : f32 to vector<16x1xf32>
      %186 = arith.divf %184, %185 : vector<16x1xf32>
      %cst_59 = arith.constant 9.99999974E-6 : f32
      %187 = vector.broadcast %cst_59 : f32 to vector<16x1xf32>
      %188 = arith.addf %186, %187 : vector<16x1xf32>
      %189 = math.rsqrt %188 : vector<16x1xf32>
      %190 = vector.broadcast %189 : vector<16x1xf32> to vector<16x128xf32>
      %191 = arith.mulf %181, %190 : vector<16x128xf32>
      %192 = vector.broadcast %174 : vector<1x128xf32> to vector<16x128xf32>
      %193 = arith.mulf %191, %192 : vector<16x128xf32>
      %194 = vector.broadcast %175 : vector<1x128xf32> to vector<16x128xf32>
      %195 = arith.addf %193, %194 : vector<16x128xf32>
      %c0_60 = arith.constant 0 : index
      %c0_61 = arith.constant 0 : index
      %196 = vector.load %arg11[%c0_60, %c0_61] : memref<16x128xf32, #tpu.memory_space<vmem>>, vector<16x128xf32>
      tpu.vector_store %arg11[%c0_60, %c0_61], %195 {strides = array<i32>} : memref<16x128xf32, #tpu.memory_space<vmem>>, vector<16x128xf32>,
    } else {
    }
    %c0 = arith.constant 0 : index
    %c0_1 = arith.constant 0 : index
    %3 = vector.load %arg11[%c0, %c0_1] : memref<16x128xf32, #tpu.memory_space<vmem>>, vector<16x128xf32>
    %4 = arith.truncf %3 : vector<16x128xf32> to vector<16x128xbf16>
    %c0_2 = arith.constant 0 : index
    %c0_3 = arith.constant 0 : index
    %c0_4 = arith.constant 0 : index
    %5 = vector.load %arg9[%c0_2, %c0_3, %c0_4] : memref<1x9x128xf32, #tpu.memory_space<vmem>>, vector<1x9x128xf32>
    %6 = vector.shape_cast %5 : vector<1x9x128xf32> to vector<9x128xf32>
    %c0_5 = arith.constant 0 : index
    %c0_6 = arith.constant 0 : index
    %c0_7 = arith.constant 0 : index
    %7 = vector.load %arg5[%c0_5, %c0_6, %c0_7] : memref<1x128x384xbf16, #tpu.memory_space<vmem>>, vector<1x128x384xbf16>
    %8 = vector.shape_cast %7 : vector<1x128x384xbf16> to vector<128x384xbf16>
    %cst = arith.constant dense<0.000000e+00> : vector<16x384xf32>
    %9 = tpu.matmul %4, %8, %cst {dimension_numbers = #tpu.dot_dimension_numbers<[1], [0], [0], [1], [0, 0, 1, 1], [], []>} : vector<16x128xbf16>, vector<128x384xbf16>, vector<16x384xf32> -> vector<16x384xf32>
    %10 = vector.extract_strided_slice %9 {offsets = [0, 0], sizes = [16, 128], strides = [1, 1]} : vector<16x384xf32> to vector<16x128xf32>
    %11 = vector.extract_strided_slice %6 {offsets = [0, 0], sizes = [1, 128], strides = [1, 1]} : vector<9x128xf32> to vector<1x128xf32>
    %12 = vector.broadcast %11 : vector<1x128xf32> to vector<16x128xf32>
    %13 = arith.addf %10, %12 : vector<16x128xf32>
    %cst_8 = arith.constant 0.176776692 : f32
    %14 = vector.broadcast %cst_8 : f32 to vector<16x128xf32>
    %15 = arith.mulf %13, %14 : vector<16x128xf32>
    %16 = vector.extract_strided_slice %9 {offsets = [0, 128], sizes = [16, 128], strides = [1, 1]} : vector<16x384xf32> to vector<16x128xf32>
    %17 = vector.extract_strided_slice %6 {offsets = [1, 0], sizes = [1, 128], strides = [1, 1]} : vector<9x128xf32> to vector<1x128xf32>
    %18 = vector.broadcast %17 : vector<1x128xf32> to vector<16x128xf32>
    %19 = arith.addf %16, %18 : vector<16x128xf32>
    %20 = vector.extract_strided_slice %9 {offsets = [0, 256], sizes = [16, 128], strides = [1, 1]} : vector<16x384xf32> to vector<16x128xf32>
    %21 = vector.extract_strided_slice %6 {offsets = [2, 0], sizes = [1, 128], strides = [1, 1]} : vector<9x128xf32> to vector<1x128xf32>
    %22 = vector.broadcast %21 : vector<1x128xf32> to vector<16x128xf32>
    %23 = arith.addf %20, %22 : vector<16x128xf32>
    %24 = vector.extract_strided_slice %15 {offsets = [0, 0], sizes = [16, 32], strides = [1, 1]} : vector<16x128xf32> to vector<16x32xf32>
    %25 = vector.shape_cast %24 : vector<16x32xf32> to vector<2x8x32xf32>
    %26 = vector.extract_strided_slice %15 {offsets = [0, 32], sizes = [16, 32], strides = [1, 1]} : vector<16x128xf32> to vector<16x32xf32>
    %27 = vector.shape_cast %26 : vector<16x32xf32> to vector<2x8x32xf32>
    %28 = vector.extract_strided_slice %15 {offsets = [0, 64], sizes = [16, 32], strides = [1, 1]} : vector<16x128xf32> to vector<16x32xf32>
    %29 = vector.shape_cast %28 : vector<16x32xf32> to vector<2x8x32xf32>
    %30 = vector.extract_strided_slice %15 {offsets = [0, 96], sizes = [16, 32], strides = [1, 1]} : vector<16x128xf32> to vector<16x32xf32>
    %31 = vector.shape_cast %30 : vector<16x32xf32> to vector<2x8x32xf32>
    %32 = tpu.concatenate %25, %27, %29, %31 in 0 : vector<2x8x32xf32>, vector<2x8x32xf32>, vector<2x8x32xf32>, vector<2x8x32xf32> -> vector<8x8x32xf32>
    %33 = arith.truncf %32 : vector<8x8x32xf32> to vector<8x8x32xbf16>
    %34 = vector.extract_strided_slice %19 {offsets = [0, 0], sizes = [16, 32], strides = [1, 1]} : vector<16x128xf32> to vector<16x32xf32>
    %35 = vector.shape_cast %34 : vector<16x32xf32> to vector<2x8x32xf32>
    %36 = vector.extract_strided_slice %19 {offsets = [0, 32], sizes = [16, 32], strides = [1, 1]} : vector<16x128xf32> to vector<16x32xf32>
    %37 = vector.shape_cast %36 : vector<16x32xf32> to vector<2x8x32xf32>
    %38 = vector.extract_strided_slice %19 {offsets = [0, 64], sizes = [16, 32], strides = [1, 1]} : vector<16x128xf32> to vector<16x32xf32>
    %39 = vector.shape_cast %38 : vector<16x32xf32> to vector<2x8x32xf32>
    %40 = vector.extract_strided_slice %19 {offsets = [0, 96], sizes = [16, 32], strides = [1, 1]} : vector<16x128xf32> to vector<16x32xf32>
    %41 = vector.shape_cast %40 : vector<16x32xf32> to vector<2x8x32xf32>
    %42 = tpu.concatenate %35, %37, %39, %41 in 0 : vector<2x8x32xf32>, vector<2x8x32xf32>, vector<2x8x32xf32>, vector<2x8x32xf32> -> vector<8x8x32xf32>
    %43 = arith.truncf %42 : vector<8x8x32xf32> to vector<8x8x32xbf16>
    %44 = vector.extract_strided_slice %23 {offsets = [0, 0], sizes = [16, 32], strides = [1, 1]} : vector<16x128xf32> to vector<16x32xf32>
    %45 = vector.shape_cast %44 : vector<16x32xf32> to vector<2x8x32xf32>
    %46 = vector.extract_strided_slice %23 {offsets = [0, 32], sizes = [16, 32], strides = [1, 1]} : vector<16x128xf32> to vector<16x32xf32>
    %47 = vector.shape_cast %46 : vector<16x32xf32> to vector<2x8x32xf32>
    %48 = vector.extract_strided_slice %23 {offsets = [0, 64], sizes = [16, 32], strides = [1, 1]} : vector<16x128xf32> to vector<16x32xf32>
    %49 = vector.shape_cast %48 : vector<16x32xf32> to vector<2x8x32xf32>
    %50 = vector.extract_strided_slice %23 {offsets = [0, 96], sizes = [16, 32], strides = [1, 1]} : vector<16x128xf32> to vector<16x32xf32>
    %51 = vector.shape_cast %50 : vector<16x32xf32> to vector<2x8x32xf32>
    %52 = tpu.concatenate %45, %47, %49, %51 in 0 : vector<2x8x32xf32>, vector<2x8x32xf32>, vector<2x8x32xf32>, vector<2x8x32xf32> -> vector<8x8x32xf32>
    %53 = arith.truncf %52 : vector<8x8x32xf32> to vector<8x8x32xbf16>
    "tpu.trace_start"() <{level = 10 : i32, message = "zqd,zkd->zqk"}> : () -> ()
    %cst_9 = arith.constant dense<0.000000e+00> : vector<8x8x8xf32>
    %54 = tpu.matmul %33, %43, %cst_9 {dimension_numbers = #tpu.dot_dimension_numbers<[2], [2], [1], [1], [0, 0, 0, 1, 1, 1], [0], [0]>} : vector<8x8x32xbf16>, vector<8x8x32xbf16>, vector<8x8x8xf32> -> vector<8x8x8xf32>
    "tpu.trace_stop"() : () -> ()
    %55 = vector.shape_cast %54 : vector<8x8x8xf32> to vector<4x2x8x8xf32>
    %c0_10 = arith.constant 0 : index
    %c0_11 = arith.constant 0 : index
    %c0_12 = arith.constant 0 : index
    %56 = vector.load %arg3[%c0_10, %c0_11, %c0_12] : memref<2x1x8xf32, #tpu.memory_space<vmem>>, vector<2x1x8xf32>
    %57 = vector.shape_cast %56 : vector<2x1x8xf32> to vector<1x2x1x8xf32>
    %58 = vector.broadcast %57 : vector<1x2x1x8xf32> to vector<4x2x8x8xf32>
    %59 = arith.addf %55, %58 : vector<4x2x8x8xf32>
    %cst_13 = arith.constant dense<0xFF800000> : vector<4x2x8xf32>
    %60 = vector.multi_reduction <maximumf>, %59, %cst_13 [3] : vector<4x2x8x8xf32> to vector<4x2x8xf32>
    %61 = vector.shape_cast %60 : vector<4x2x8xf32> to vector<4x2x8x1xf32>
    %62 = vector.broadcast %61 : vector<4x2x8x1xf32> to vector<4x2x8x8xf32>
    %63 = arith.subf %59, %62 : vector<4x2x8x8xf32>
    %64 = math.exp %63 : vector<4x2x8x8xf32>
    %cst_14 = arith.constant dense<0.000000e+00> : vector<4x2x8xf32>
    %65 = vector.multi_reduction <add>, %64, %cst_14 [3] : vector<4x2x8x8xf32> to vector<4x2x8xf32>
    %66 = vector.shape_cast %65 : vector<4x2x8xf32> to vector<4x2x8x1xf32>
    %67 = tpu.reciprocal %66 {approx = true} : vector<4x2x8x1xf32> -> vector<4x2x8x1xf32>
    %68 = vector.broadcast %67 : vector<4x2x8x1xf32> to vector<4x2x8x8xf32>
    %69 = arith.mulf %64, %68 : vector<4x2x8x8xf32>
    %70 = arith.truncf %69 : vector<4x2x8x8xf32> to vector<4x2x8x8xbf16>
    %71 = vector.shape_cast %70 : vector<4x2x8x8xbf16> to vector<8x8x8xbf16>
    "tpu.trace_start"() <{level = 10 : i32, message = "zqk,zkd->zqd"}> : () -> ()
    %cst_15 = arith.constant dense<0.000000e+00> : vector<8x8x32xf32>
    %72 = tpu.matmul %71, %53, %cst_15 {dimension_numbers = #tpu.dot_dimension_numbers<[2], [1], [1], [2], [0, 0, 0, 1, 1, 2], [0], [0]>} : vector<8x8x8xbf16>, vector<8x8x32xbf16>, vector<8x8x32xf32> -> vector<8x8x32xf32>
    "tpu.trace_stop"() : () -> ()
    %c0_16 = arith.constant 0 : index
    %c0_17 = arith.constant 0 : index
    %c0_18 = arith.constant 0 : index
    %73 = vector.load %arg6[%c0_16, %c0_17, %c0_18] : memref<1x128x128xbf16, #tpu.memory_space<vmem>>, vector<1x128x128xbf16>
    %74 = vector.shape_cast %73 : vector<1x128x128xbf16> to vector<128x128xbf16>
    %cst_19 = arith.constant 0.000000e+00 : f32
    %75 = vector.broadcast %cst_19 : f32 to vector<16x128xf32>
    %76 = vector.extract_strided_slice %72 {offsets = [0, 0, 0], sizes = [2, 8, 32], strides = [1, 1, 1]} : vector<8x8x32xf32> to vector<2x8x32xf32>
    %77 = vector.shape_cast %76 : vector<2x8x32xf32> to vector<16x32xf32>
    %78 = arith.truncf %77 : vector<16x32xf32> to vector<16x32xbf16>
    %79 = vector.extract_strided_slice %74 {offsets = [0, 0], sizes = [32, 128], strides = [1, 1]} : vector<128x128xbf16> to vector<32x128xbf16>
    %cst_20 = arith.constant dense<0.000000e+00> : vector<16x128xf32>
    %80 = tpu.matmul %78, %79, %cst_20 {dimension_numbers = #tpu.dot_dimension_numbers<[1], [0], [0], [1], [0, 0, 1, 1], [], []>} : vector<16x32xbf16>, vector<32x128xbf16>, vector<16x128xf32> -> vector<16x128xf32>
    %81 = arith.addf %75, %80 : vector<16x128xf32>
    %82 = vector.extract_strided_slice %72 {offsets = [2, 0, 0], sizes = [2, 8, 32], strides = [1, 1, 1]} : vector<8x8x32xf32> to vector<2x8x32xf32>
    %83 = vector.shape_cast %82 : vector<2x8x32xf32> to vector<16x32xf32>
    %84 = arith.truncf %83 : vector<16x32xf32> to vector<16x32xbf16>
    %85 = vector.extract_strided_slice %74 {offsets = [32, 0], sizes = [32, 128], strides = [1, 1]} : vector<128x128xbf16> to vector<32x128xbf16>
    %cst_21 = arith.constant dense<0.000000e+00> : vector<16x128xf32>
    %86 = tpu.matmul %84, %85, %cst_21 {dimension_numbers = #tpu.dot_dimension_numbers<[1], [0], [0], [1], [0, 0, 1, 1], [], []>} : vector<16x32xbf16>, vector<32x128xbf16>, vector<16x128xf32> -> vector<16x128xf32>
    %87 = arith.addf %81, %86 : vector<16x128xf32>
    %88 = vector.extract_strided_slice %72 {offsets = [4, 0, 0], sizes = [2, 8, 32], strides = [1, 1, 1]} : vector<8x8x32xf32> to vector<2x8x32xf32>
    %89 = vector.shape_cast %88 : vector<2x8x32xf32> to vector<16x32xf32>
    %90 = arith.truncf %89 : vector<16x32xf32> to vector<16x32xbf16>
    %91 = vector.extract_strided_slice %74 {offsets = [64, 0], sizes = [32, 128], strides = [1, 1]} : vector<128x128xbf16> to vector<32x128xbf16>
    %cst_22 = arith.constant dense<0.000000e+00> : vector<16x128xf32>
    %92 = tpu.matmul %90, %91, %cst_22 {dimension_numbers = #tpu.dot_dimension_numbers<[1], [0], [0], [1], [0, 0, 1, 1], [], []>} : vector<16x32xbf16>, vector<32x128xbf16>, vector<16x128xf32> -> vector<16x128xf32>
    %93 = arith.addf %87, %92 : vector<16x128xf32>
    %94 = vector.extract_strided_slice %72 {offsets = [6, 0, 0], sizes = [2, 8, 32], strides = [1, 1, 1]} : vector<8x8x32xf32> to vector<2x8x32xf32>
    %95 = vector.shape_cast %94 : vector<2x8x32xf32> to vector<16x32xf32>
    %96 = arith.truncf %95 : vector<16x32xf32> to vector<16x32xbf16>
    %97 = vector.extract_strided_slice %74 {offsets = [96, 0], sizes = [32, 128], strides = [1, 1]} : vector<128x128xbf16> to vector<32x128xbf16>
    %cst_23 = arith.constant dense<0.000000e+00> : vector<16x128xf32>
    %98 = tpu.matmul %96, %97, %cst_23 {dimension_numbers = #tpu.dot_dimension_numbers<[1], [0], [0], [1], [0, 0, 1, 1], [], []>} : vector<16x32xbf16>, vector<32x128xbf16>, vector<16x128xf32> -> vector<16x128xf32>
    %99 = arith.addf %93, %98 : vector<16x128xf32>
    %100 = vector.extract_strided_slice %6 {offsets = [3, 0], sizes = [1, 128], strides = [1, 1]} : vector<9x128xf32> to vector<1x128xf32>
    %101 = vector.broadcast %100 : vector<1x128xf32> to vector<16x128xf32>
    %102 = arith.addf %99, %101 : vector<16x128xf32>
    %103 = arith.addf %102, %3 : vector<16x128xf32>
    %104 = vector.extract_strided_slice %6 {offsets = [4, 0], sizes = [1, 128], strides = [1, 1]} : vector<9x128xf32> to vector<1x128xf32>
    %105 = vector.extract_strided_slice %6 {offsets = [5, 0], sizes = [1, 128], strides = [1, 1]} : vector<9x128xf32> to vector<1x128xf32>
    %cst_24 = arith.constant dense<0.000000e+00> : vector<16xf32>
    %106 = vector.multi_reduction <add>, %103, %cst_24 [1] : vector<16x128xf32> to vector<16xf32>
    %107 = vector.shape_cast %106 : vector<16xf32> to vector<16x1xf32>
    %cst_25 = arith.constant 1.280000e+02 : f32
    %108 = vector.broadcast %cst_25 : f32 to vector<16x1xf32>
    %109 = arith.divf %107, %108 : vector<16x1xf32>
    %110 = vector.broadcast %109 : vector<16x1xf32> to vector<16x128xf32>
    %111 = arith.subf %103, %110 : vector<16x128xf32>
    %112 = arith.mulf %111, %111 : vector<16x128xf32>
    %cst_26 = arith.constant dense<0.000000e+00> : vector<16xf32>
    %113 = vector.multi_reduction <add>, %112, %cst_26 [1] : vector<16x128xf32> to vector<16xf32>
    %114 = vector.shape_cast %113 : vector<16xf32> to vector<16x1xf32>
    %cst_27 = arith.constant 1.280000e+02 : f32
    %115 = vector.broadcast %cst_27 : f32 to vector<16x1xf32>
    %116 = arith.divf %114, %115 : vector<16x1xf32>
    %cst_28 = arith.constant 9.99999974E-6 : f32
    %117 = vector.broadcast %cst_28 : f32 to vector<16x1xf32>
    %118 = arith.addf %116, %117 : vector<16x1xf32>
    %119 = math.rsqrt %118 : vector<16x1xf32>
    %120 = vector.broadcast %119 : vector<16x1xf32> to vector<16x128xf32>
    %121 = arith.mulf %111, %120 : vector<16x128xf32>
    %122 = vector.broadcast %104 : vector<1x128xf32> to vector<16x128xf32>
    %123 = arith.mulf %121, %122 : vector<16x128xf32>
    %124 = vector.broadcast %105 : vector<1x128xf32> to vector<16x128xf32>
    %125 = arith.addf %123, %124 : vector<16x128xf32>
    %126 = arith.truncf %125 : vector<16x128xf32> to vector<16x128xbf16>
    %c0_29 = arith.constant 0 : index
    %c0_30 = arith.constant 0 : index
    %c0_31 = arith.constant 0 : index
    %127 = vector.load %arg7[%c0_29, %c0_30, %c0_31] : memref<1x128x512xbf16, #tpu.memory_space<vmem>>, vector<1x128x512xbf16>
    %128 = vector.shape_cast %127 : vector<1x128x512xbf16> to vector<128x512xbf16>
    %cst_32 = arith.constant dense<0.000000e+00> : vector<16x512xf32>
    %129 = tpu.matmul %126, %128, %cst_32 {dimension_numbers = #tpu.dot_dimension_numbers<[1], [0], [0], [1], [0, 0, 1, 1], [], []>} : vector<16x128xbf16>, vector<128x512xbf16>, vector<16x512xf32> -> vector<16x512xf32>
    %c0_33 = arith.constant 0 : index
    %c0_34 = arith.constant 0 : index
    %c0_35 = arith.constant 0 : index
    %130 = vector.load %arg10[%c0_33, %c0_34, %c0_35] : memref<1x1x512xf32, #tpu.memory_space<vmem>>, vector<1x1x512xf32>
    %131 = vector.shape_cast %130 : vector<1x1x512xf32> to vector<1x512xf32>
    %132 = vector.broadcast %131 : vector<1x512xf32> to vector<16x512xf32>
    %133 = arith.addf %129, %132 : vector<16x512xf32>
    %cst_36 = arith.constant 5.000000e-01 : f32
    %134 = vector.broadcast %cst_36 : f32 to vector<16x512xf32>
    %135 = arith.mulf %134, %133 : vector<16x512xf32>
    %cst_37 = arith.constant 0.707106769 : f32
    %136 = vector.broadcast %cst_37 : f32 to vector<16x512xf32>
    %137 = arith.mulf %133, %136 : vector<16x512xf32>
    %138 = math.erf %137 : vector<16x512xf32>
    %cst_38 = arith.constant 1.000000e+00 : f32
    %139 = vector.broadcast %cst_38 : f32 to vector<16x512xf32>
    %140 = arith.addf %139, %138 : vector<16x512xf32>
    %141 = arith.mulf %135, %140 : vector<16x512xf32>
    %142 = arith.truncf %141 : vector<16x512xf32> to vector<16x512xbf16>
    %c0_39 = arith.constant 0 : index
    %c0_40 = arith.constant 0 : index
    %c0_41 = arith.constant 0 : index
    %143 = vector.load %arg8[%c0_39, %c0_40, %c0_41] : memref<1x512x128xbf16, #tpu.memory_space<vmem>>, vector<1x512x128xbf16>
    %144 = vector.shape_cast %143 : vector<1x512x128xbf16> to vector<512x128xbf16>
    %cst_42 = arith.constant dense<0.000000e+00> : vector<16x128xf32>
    %145 = tpu.matmul %142, %144, %cst_42 {dimension_numbers = #tpu.dot_dimension_numbers<[1], [0], [0], [1], [0, 0, 1, 1], [], []>} : vector<16x512xbf16>, vector<512x128xbf16>, vector<16x128xf32> -> vector<16x128xf32>
    %146 = vector.extract_strided_slice %6 {offsets = [6, 0], sizes = [1, 128], strides = [1, 1]} : vector<9x128xf32> to vector<1x128xf32>
    %147 = vector.broadcast %146 : vector<1x128xf32> to vector<16x128xf32>
    %148 = arith.addf %145, %147 : vector<16x128xf32>
    %149 = arith.addf %148, %125 : vector<16x128xf32>
    %150 = vector.extract_strided_slice %6 {offsets = [7, 0], sizes = [1, 128], strides = [1, 1]} : vector<9x128xf32> to vector<1x128xf32>
    %151 = vector.extract_strided_slice %6 {offsets = [8, 0], sizes = [1, 128], strides = [1, 1]} : vector<9x128xf32> to vector<1x128xf32>
    %cst_43 = arith.constant dense<0.000000e+00> : vector<16xf32>
    %152 = vector.multi_reduction <add>, %149, %cst_43 [1] : vector<16x128xf32> to vector<16xf32>
    %153 = vector.shape_cast %152 : vector<16xf32> to vector<16x1xf32>
    %cst_44 = arith.constant 1.280000e+02 : f32
    %154 = vector.broadcast %cst_44 : f32 to vector<16x1xf32>
    %155 = arith.divf %153, %154 : vector<16x1xf32>
    %156 = vector.broadcast %155 : vector<16x1xf32> to vector<16x128xf32>
    %157 = arith.subf %149, %156 : vector<16x128xf32>
    %158 = arith.mulf %157, %157 : vector<16x128xf32>
    %cst_45 = arith.constant dense<0.000000e+00> : vector<16xf32>
    %159 = vector.multi_reduction <add>, %158, %cst_45 [1] : vector<16x128xf32> to vector<16xf32>
    %160 = vector.shape_cast %159 : vector<16xf32> to vector<16x1xf32>
    %cst_46 = arith.constant 1.280000e+02 : f32
    %161 = vector.broadcast %cst_46 : f32 to vector<16x1xf32>
    %162 = arith.divf %160, %161 : vector<16x1xf32>
    %cst_47 = arith.constant 9.99999974E-6 : f32
    %163 = vector.broadcast %cst_47 : f32 to vector<16x1xf32>
    %164 = arith.addf %162, %163 : vector<16x1xf32>
    %165 = math.rsqrt %164 : vector<16x1xf32>
    %166 = vector.broadcast %165 : vector<16x1xf32> to vector<16x128xf32>
    %167 = arith.mulf %157, %166 : vector<16x128xf32>
    %168 = vector.broadcast %150 : vector<1x128xf32> to vector<16x128xf32>
    %169 = arith.mulf %167, %168 : vector<16x128xf32>
    %170 = vector.broadcast %151 : vector<1x128xf32> to vector<16x128xf32>
    %171 = arith.addf %169, %170 : vector<16x128xf32>
    %c0_48 = arith.constant 0 : index
    %c0_49 = arith.constant 0 : index
    %172 = vector.load %arg11[%c0_48, %c0_49] : memref<16x128xf32, #tpu.memory_space<vmem>>, vector<16x128xf32>
    tpu.vector_store %arg11[%c0_48, %c0_49], %171 {strides = array<i32>} : memref<16x128xf32, #tpu.memory_space<vmem>>, vector<16x128xf32>,
    return
  }
  func.func @transform_0(%arg0: i32, %arg1: i32) -> (i32, i32) {
    %c0_i32 = arith.constant 0 : i32
    %c0_i32_0 = arith.constant 0 : i32
    return %arg0, %c0_i32 : i32, i32
  }
  func.func @transform_1(%arg0: i32, %arg1: i32) -> (i32, i32, i32) {
    %c0_i32 = arith.constant 0 : i32
    %c0_i32_0 = arith.constant 0 : i32
    %c0_i32_1 = arith.constant 0 : i32
    return %arg0, %c0_i32, %c0_i32_0 : i32, i32, i32
  }
  func.func @transform_2(%arg0: i32, %arg1: i32) -> (i32, i32) {
    %c0_i32 = arith.constant 0 : i32
    %c0_i32_0 = arith.constant 0 : i32
    %c0_i32_1 = arith.constant 0 : i32
    return %c0_i32, %c0_i32_0 : i32, i32
  }
  func.func @transform_3(%arg0: i32, %arg1: i32) -> (i32, i32, i32) {
    %c0_i32 = arith.constant 0 : i32
    %c0_i32_0 = arith.constant 0 : i32
    %c0_i32_1 = arith.constant 0 : i32
    return %arg1, %c0_i32, %c0_i32_0 : i32, i32, i32
  }
  func.func @transform_4(%arg0: i32, %arg1: i32) -> (i32, i32, i32) {
    %c0_i32 = arith.constant 0 : i32
    %c0_i32_0 = arith.constant 0 : i32
    %c0_i32_1 = arith.constant 0 : i32
    return %arg1, %c0_i32, %c0_i32_0 : i32, i32, i32
  }
  func.func @transform_5(%arg0: i32, %arg1: i32) -> (i32, i32, i32) {
    %c0_i32 = arith.constant 0 : i32
    %c0_i32_0 = arith.constant 0 : i32
    %c0_i32_1 = arith.constant 0 : i32
    return %arg1, %c0_i32, %c0_i32_0 : i32, i32, i32
  }
  func.func @transform_6(%arg0: i32, %arg1: i32) -> (i32, i32, i32) {
    %c0_i32 = arith.constant 0 : i32
    %c0_i32_0 = arith.constant 0 : i32
    %c0_i32_1 = arith.constant 0 : i32
    return %arg1, %c0_i32, %c0_i32_0 : i32, i32, i32
  }
  func.func @transform_7(%arg0: i32, %arg1: i32) -> (i32, i32, i32) {
    %c0_i32 = arith.constant 0 : i32
    %c0_i32_0 = arith.constant 0 : i32
    %c0_i32_1 = arith.constant 0 : i32
    return %arg1, %c0_i32, %c0_i32_0 : i32, i32, i32
  }
  func.func @transform_8(%arg0: i32, %arg1: i32) -> (i32, i32, i32) {
    %c0_i32 = arith.constant 0 : i32
    %c0_i32_0 = arith.constant 0 : i32
    %c0_i32_1 = arith.constant 0 : i32
    return %arg1, %c0_i32, %c0_i32_0 : i32, i32, i32
  }
  func.func @transform_9(%arg0: i32, %arg1: i32) -> (i32, i32) {
    %c0_i32 = arith.constant 0 : i32
    %c0_i32_0 = arith.constant 0 : i32
    return %arg0, %c0_i32 : i32, i32
  }
}

</mosaic_0001>

<bundles_post_ra>
// kernel: tpu_custom_call.1
= control target key start
LH: loop header
LB: loop body
LE: loop exit
PB: predicated region body
PF: predicated region fallthrough
CT: control target
= control target key end

     0   :  { %s4655_s0 = inlined_call_operand.vmem [shape: f32[16,128], index: 0, kind: input, shape index: {}]   ;;  %s4656_s1 = inlined_call_operand.vmem [shape: f32[2,1,8], index: 1, kind: input, shape index: {}]   ;;  %s4657_s2 = inlined_call_operand.vmem [shape: f32[2,128], index: 2, kind: input, shape index: {}]   ;;  %s4658_s3 = inlined_call_operand.hbm [shape: bf16[2,128,384], index: 3, kind: input, shape index: {}]   ;;  %s4659_s4 = inlined_call_operand.hbm [shape: bf16[2,128,128], index: 4, kind: input, shape index: {}]   ;;  %s4660_s5 = inlined_call_operand.hbm [shape: bf16[2,128,512], index: 5, kind: input, shape index: {}]   ;;  %s4661_s6 = inlined_call_operand.hbm [shape: bf16[2,512,128], index: 6, kind: input, shape index: {}]   ;;  %s4662_s7 = inlined_call_operand.vmem [shape: f32[2,9,128], index: 7, kind: input, shape index: {}]   ;;  %s4663_s8 = inlined_call_operand.vmem [shape: f32[2,1,512], index: 8, kind: input, shape index: {}]   ;;  %s4664_s9 = inlined_call_operand.hbm [shape: f32[16,128], index: 9, kind: output, shape index: {}]  }
   0x1   :  { %4671 = sst [smem:[#allocation19_spill]] %s4658_s3 }
   0x2   :  { %4672 = sst [smem:[#allocation20_spill]] %s4659_s4 }
   0x3   :  { %14 = vsyncpa [#allocation3], 0 }
   0x4   :  { %16 = vsyncpa [#allocation3 + $0x1], 0 }
   0x5   :  { %17 = vsyncpa [#allocation6], 0 }
   0x6   :  { %19 = vsyncpa [#allocation6 + $0x1], 0 }
   0x7   :  { %20 = vsyncpa [#allocation9], 0 }
   0x8   :  { %22 = vsyncpa [#allocation9 + $0x1], 0 }
   0x9   :  { %23 = vsyncpa [#allocation4], 0  ;;  %s4012_s30 = smov 0   ;;  %s4014_s10 = smov 0  }
   0xa   :  { %s4016_s11 = smov 0   ;;  %s4018_s12 = smov 0  }
   0xb   :  { %s4020_s13 = smov 0   ;;  %s4022_s14 = smov 0  }
   0xc LB: > { %4673 = sst [smem:[#allocation15_spill]] %s3929_s11  ;;  %s4041_s15 = sadd.s32 4294967295, %s3941_s14   ;;  %s3941_s14 = sphi %s4022_s14, %s29_s14   ;;  %s3937_s13 = sphi %s4020_s13, %s4695_s13   ;;  %s3933_s12 = sphi %s4018_s12, %s4694_s12   ;;  %s3929_s11 = sphi %s4016_s11, %s4690_s11   ;;  %s3925_s10 = sphi %s4014_s10, %s4693_s10   ;;  %s3921_s30 = sphi %s4012_s30, %s4692_s30  }
   0xd   : > { %4674 = sst [smem:[#allocation16_spill]] %s3941_s14  ;;  %s38_s16 = sadd.s32 1, %s3937_s13 }
   0xe   : > { %p39_p0 = scmp.ge.s32.totalorder %s38_s16, 2  ;;  %s121_s17 = sadd.s32 1, %s3929_s11 }
   0xf   : > { %p128_p1 = scmp.ne.s32.totalorder %s3929_s11, %s3925_s10  ;;  %p129_p2 = scmp.eq.s32.totalorder %s3941_s14, 0 }
  0x10   : > { %s4697_s16 = smov (%p39_p0, %s38_s16), 0  ;;  %p134_p4 = scmp.ne.s32.totalorder %s3925_s10, %s3921_s30 }
  0x11   : > { %4675 = sst [smem:[#allocation17_spill]] %s4697_s16  ;;  %p130_p3 = por %p129_p2, %p128_p1 }
  0x12   : > { %s118_s18 = ssub.s32 %s3937_s13, %s4697_s16  ;;  %p135_p5 = scmp.eq.s32.totalorder %s4041_s15, 0 }
  0x13   : > { %p119_p6 = scmp.eq.s32.totalorder %s118_s18, 0  ;;  %p3439_p8 = scmp.lt.s32.totalorder %s3941_s14, 2 }
  0x14   : > { %p4054_p7 = por %p135_p5, %p134_p4  ;;  %s4063_s21 = sand.u32 1, %s3929_s11  }
  0x15   : > { %s4060_s20 = scalar_select %p119_p6, %s3929_s11, %s121_s17  }
  0x16   : > { %s4676_s19 = scalar_select %p4054_p7, 1, 0 }
  0x17   : > { %4677 = sst [smem:[#allocation18_spill]] %s4060_s20  ;;  %p4065_p9 = pnand %p3439_p8, %p130_p3 }
  0x18   : > { %s355_s23 = sand.u32 1, %s3941_s14   ;;  %s3020_s24 = sshll.u32 %s4063_s21, 6 }
  0x19   : > { %s3162_s25 = sshll.u32 %s3937_s13, 10  ;;  %s4679_s4 = sld [smem:[#allocation20_spill]] }
  0x1a   : > { %s359_s29 = scalar_lea.vmem [#allocation5], %s3020_s24  ;;  %s4080_s17 = scalar_lea.sflag [#allocation6], %s355_s23 }
  0x1b   : > { %s366_s30 = sshll.u32 %s359_s29, 4  ;;  %p4086_p12 = pneg %p4065_p9  ;;  %s4077_s30 = int_to_ptr.vmem [resolvable:$true] %s366_s30 }
  0x1f   : > { %s4075_s28 = scalar_lea.hbm %s4679_s4, %s3162_s25  ;;  %s3738_s24 = scalar_lea.hbm %s4679_s4, 2048 }
  0x20   : > { %s3733_s18 = scalar_lea.hbm %s4075_s28, 1024  ;;  %p3739_p1 = scmp.lt.u32.totalorder %s4075_s28, %s4679_s4 }
  0x21   : > { %p3734_p11 = scmp.ne.s32.totalorder %s4075_s28, %s3733_s18  ;;  %p3740_p2 = scmp.lt.u32.totalorder %s3738_s24, %s3733_s18 }
  0x22   : > { %p3742_p4 = scmp.lt.u32.totalorder %s3733_s18, %s4075_s28 }
  0x23   : > { %p3736_p13 = pnand %p4086_p12, %p3734_p11  ;;  %p3741_p3 = por %p3740_p2, %p3739_p1 }
  0x25   : > { %p3737_p0 = pneg %p3736_p13  ;;  %p3743_p5 = por %p3742_p4, %p3741_p3 }
  0x27   : > { %p3744_p6 = pnand %p3743_p5, %p3737_p0 }
  0x29   : > { %3747 = shalt.err (!%p3744_p6)
}
  0x2a   : > { %s3748_s23 = scalar_lea.vmem %s4077_s30, 1024  ;;  %s3943_s25 = smov [#allocation5]  }
  0x2b   : > { %p3749_p8 = scmp.ne.s32.totalorder %s4077_s30, %s3748_s23  ;;  %s3753_s26 = sshll.u32 %s3943_s25, 4  ;;  %s3754_s26 = int_to_ptr.vmem [resolvable:$false] %s3753_s26 }
  0x2c   : > { %s3755_s27 = scalar_lea.vmem %s3754_s26, 2048  ;;  %p3756_p10 = scmp.lt.s32.totalorder %s4077_s30, %s3754_s26 }
  0x2d   : > { %p3751_p11 = pnand %p3749_p8, %p4086_p12  ;;  %p3757_p7 = scmp.lt.s32.totalorder %s3755_s27, %s3748_s23 }
  0x2f   : > { %p3752_p13 = pneg %p3751_p11  ;;  %p3758_p1 = por %p3757_p7, %p3756_p10 }
  0x31   : > { %p3759_p2 = pnand %p3758_p1, %p3752_p13 }
  0x33   : > { %3762 = shalt.err (!%p3759_p2)
}
  0x34   : > { %s4668_s18 = smov 64   ;;  %s4669_s24 = smov 4  }
  0x35   : > { %3432 = dma.hbm_to_vmem [thread:$0]  (!%p4065_p9), %s4075_s28, 1024, %s4077_s30, %s4080_s17, %s4668_s18, %s4668_s18, %s4669_s24  }
  0x36   : > { %p431_p7 = scmp.lt.s32.totalorder %s3941_s14, 3  ;;  %p4681_p10 = scmp.ge.s32.totalorder %s3941_s14, 1 }
  0x37   : > { %s3411_s23 = smul.u32 192, %s4063_s21  ;;  %s4683_s3 = sld [smem:[#allocation19_spill]] }
  0x38   : > { %p4116_p0 = pnand %p4681_p10, %p431_p7  ;;  %s3412_s25 = smul.u32 3072, %s3937_s13 }
  0x39   : > { %s338_s20 = scalar_lea.vmem [#allocation2], %s3411_s23  ;;  %s3023_s28 = sshll.u32 %s4063_s21, 8 }
  0x3a   : > { %s4682_s29 = scalar_select %p4116_p0, 1, 0 }
  0x3b   : > { %s345_s11 = sshll.u32 %s338_s20, 4  ;;  %s335_s30 = scalar_lea.sflag [#allocation3], %s4063_s21  ;;  %s4127_s11 = int_to_ptr.vmem [resolvable:$true] %s345_s11 }
  0x3d   : > { %s4125_s4 = scalar_lea.hbm %s4683_s3, %s3412_s25  ;;  %s3768_s25 = scalar_lea.hbm %s4683_s3, 6144 }
  0x3e   : > { %s3763_s18 = scalar_lea.hbm %s4125_s4, 3072  ;;  %p3769_p6 = scmp.lt.u32.totalorder %s4125_s4, %s4683_s3 }
  0x3f   : > { %p3764_p3 = scmp.ne.s32.totalorder %s4125_s4, %s3763_s18  ;;  %p3770_p8 = scmp.lt.u32.totalorder %s3768_s25, %s3763_s18 }
  0x40   : > { %p3772_p13 = scmp.lt.u32.totalorder %s3763_s18, %s4125_s4 }
  0x41   : > { %p3766_p4 = pnand %p3764_p3, %p4086_p12  ;;  %p3771_p11 = por %p3770_p8, %p3769_p6 }
  0x43   : > { %p3767_p5 = pneg %p3766_p4  ;;  %p3773_p1 = por %p3772_p13, %p3771_p11 }
  0x45   : > { %p3774_p2 = pnand %p3773_p1, %p3767_p5 }
  0x47   : > { %3777 = shalt.err (!%p3774_p2)
}
  0x48   : > { %s3778_s20 = scalar_lea.vmem %s4127_s11, 3072  ;;  %s3946_s14 = smov [#allocation2]  }
  0x49   : > { %p3779_p7 = scmp.ne.s32.totalorder %s4127_s11, %s3778_s20  ;;  %s3783_s24 = sshll.u32 %s3946_s14, 4  ;;  %s3784_s24 = int_to_ptr.vmem [resolvable:$false] %s3783_s24 }
  0x4a   : > { %s3785_s23 = scalar_lea.vmem %s3784_s24, 6144  ;;  %p3786_p4 = scmp.lt.s32.totalorder %s4127_s11, %s3784_s24 }
  0x4b   : > { %p3781_p10 = pnand %p3779_p7, %p4086_p12  ;;  %p3787_p0 = scmp.lt.s32.totalorder %s3785_s23, %s3778_s20 }
  0x4d   : > { %p3782_p3 = pneg %p3781_p10  ;;  %p3788_p6 = por %p3787_p0, %p3786_p4 }
  0x4f   : > { %p3789_p8 = pnand %p3788_p6, %p3782_p3 }
  0x51   : > { %3792 = shalt.err (!%p3789_p8)
}
  0x52   : > { %s3947_s18 = smov 192   ;;  %s3948_s25 = smov 12  }
  0x53   : > { %3429 = dma.hbm_to_vmem [thread:$0]  (!%p4065_p9), %s4125_s4, 3072, %s4127_s11, %s335_s30, %s3947_s18, %s3947_s18, %s3948_s25  }
  0x54   : > { %s3163_s26 = sshll.u32 %s3937_s13, 12  ;;  %s380_s24 = scalar_lea.vmem [#allocation7], %s3023_s28 }
  0x55   : > { %s4160_s14 = scalar_lea.hbm %s4660_s5, %s3163_s26  ;;  %s387_s23 = sshll.u32 %s380_s24, 4  ;;  %s4164_s23 = int_to_ptr.vmem [resolvable:$true] %s387_s23 }
  0x56   : > { %s3793_s3 = scalar_lea.hbm %s4160_s14, 4096  ;;  %s3798_s30 = scalar_lea.hbm %s4660_s5, 8192 }
  0x57   : > { %p3794_p0 = scmp.ne.s32.totalorder %s4160_s14, %s3793_s3  ;;  %p3799_p13 = scmp.lt.u32.totalorder %s4160_s14, %s4660_s5 }
  0x58   : > { %p3800_p1 = scmp.lt.u32.totalorder %s3798_s30, %s3793_s3  ;;  %p3802_p7 = scmp.lt.u32.totalorder %s3793_s3, %s4160_s14 }
  0x59   : > { %p3796_p5 = pnand %p3794_p0, %p4086_p12 }
  0x5a   : > { %p3801_p2 = por %p3800_p1, %p3799_p13 }
  0x5b   : > { %p3797_p11 = pneg %p3796_p5 }
  0x5c   : > { %p3803_p10 = por %p3802_p7, %p3801_p2 }
  0x5e   : > { %p3804_p3 = pnand %p3803_p10, %p3797_p11 }
  0x60   : > { %3807 = shalt.err (!%p3804_p3)
}
  0x61   : > { %s3808_s27 = scalar_lea.vmem %s4164_s23, 4096  ;;  %s3949_s20 = smov [#allocation7]  }
  0x62   : > { %p3809_p4 = scmp.ne.s32.totalorder %s4164_s23, %s3808_s27  ;;  %s3813_s24 = sshll.u32 %s3949_s20, 4  ;;  %s3814_s24 = int_to_ptr.vmem [resolvable:$false] %s3813_s24 }
  0x63   : > { %s3815_s4 = scalar_lea.vmem %s3814_s24, 8192  ;;  %p3816_p0 = scmp.lt.s32.totalorder %s4164_s23, %s3814_s24 }
  0x64   : > { %p3811_p6 = pnand %p3809_p4, %p4086_p12  ;;  %p3817_p5 = scmp.lt.s32.totalorder %s3815_s4, %s3808_s27 }
  0x66   : > { %p3812_p8 = pneg %p3811_p6  ;;  %p3818_p13 = por %p3817_p5, %p3816_p0 }
  0x68   : > { %p3819_p1 = pnand %p3818_p13, %p3812_p8 }
  0x6a   : > { %3822 = shalt.err (!%p3819_p1)
}
  0x6b   : > { %s3950_s3 = smov 256   ;;  %s3951_s11 = smov 16  }
  0x6c   : > { %3435 = dma.hbm_to_vmem [thread:$0]  (!%p4065_p9), %s4160_s14, 4096, %s4164_s23, %s4080_s17, %s3950_s3, %s3950_s3, %s3951_s11  }
  0x6d   : > { %s4193_s25 = scalar_lea.hbm %s4661_s6, %s3163_s26  ;;  %s401_s27 = scalar_lea.vmem [#allocation8], %s3023_s28 }
  0x6e   : > { %s408_s20 = sshll.u32 %s401_s27, 4  ;;  %s398_s24 = scalar_lea.sflag [#allocation9], %s4063_s21  ;;  %s4197_s20 = int_to_ptr.vmem [resolvable:$true] %s408_s20 }
  0x6f   : > { %s3823_s4 = scalar_lea.hbm %s4193_s25, 4096  ;;  %s3828_s26 = scalar_lea.hbm %s4661_s6, 8192 }
  0x70   : > { %p3824_p11 = scmp.ne.s32.totalorder %s4193_s25, %s3823_s4  ;;  %p3829_p10 = scmp.lt.u32.totalorder %s4193_s25, %s4661_s6 }
  0x71   : > { %p3830_p3 = scmp.lt.u32.totalorder %s3828_s26, %s3823_s4  ;;  %p3832_p6 = scmp.lt.u32.totalorder %s3823_s4, %s4193_s25 }
  0x72   : > { %p3826_p2 = pnand %p3824_p11, %p4086_p12 }
  0x73   : > { %p3831_p4 = por %p3830_p3, %p3829_p10 }
  0x74   : > { %p3827_p7 = pneg %p3826_p2 }
  0x75   : > { %p3833_p8 = por %p3832_p6, %p3831_p4 }
  0x77   : > { %p3834_p0 = pnand %p3833_p8, %p3827_p7 }
  0x79   : > { %3837 = shalt.err (!%p3834_p0)
}
  0x7a   : > { %s3838_s28 = scalar_lea.vmem %s4197_s20, 4096  ;;  %s3952_s11 = smov [#allocation8]  }
  0x7b   : > { %p3839_p5 = scmp.ne.s32.totalorder %s4197_s20, %s3838_s28  ;;  %s3843_s30 = sshll.u32 %s3952_s11, 4  ;;  %s3844_s30 = int_to_ptr.vmem [resolvable:$false] %s3843_s30 }
  0x7c   : > { %s3845_s18 = scalar_lea.vmem %s3844_s30, 8192  ;;  %p3846_p11 = scmp.lt.s32.totalorder %s4197_s20, %s3844_s30 }
  0x7d   : > { %p3841_p13 = pnand %p3839_p5, %p4086_p12  ;;  %p3847_p2 = scmp.lt.s32.totalorder %s3845_s18, %s3838_s28 }
  0x7f   : > { %p3842_p1 = pneg %p3841_p13  ;;  %p3848_p10 = por %p3847_p2, %p3846_p11 }
  0x81   : > { %p3849_p3 = pnand %p3848_p10, %p3842_p1 }
  0x83   : > { %3852 = shalt.err (!%p3849_p3)
}
  0x84   : > { %s4684_s27 = smov 4   ;;  %s4685_s4 = smov 64  }
  0x85   : > { %3438 = dma.hbm_to_vmem [thread:$0]  (!%p4065_p9), %s4193_s25, 4096, %s4197_s20, %s398_s24, %s4685_s4, %s4685_s4, %s4684_s27  }
  0x86   : > { %p4686_p12 = scmp.ne.s32.totalorder %s4682_s29, 0 }
  0x87   : > { %s437_s16 = sand.u32 (!%p4686_p12), 1, %s3925_s10   ;;  %p4687_p7 = scmp.ne.s32.totalorder (!%p4686_p12), %s4676_s19, 0 }
  0x88   : > { %435 = sbr.rel (%p4686_p12) target bundleno = 2938 (0xb7a), region = 56  ;;  %s438_s14 = scalar_lea.sflag (!%p4686_p12), [#allocation3], %s437_s16 }
  0x89   : > { %s3413_s17 = smul.u32 (!%p4686_p12), 192, %s437_s16 }
  0x8b   : > { %s4229_s26 = scalar_lea.vmem (!%p4686_p12), [#allocation2], %s3413_s17 }
  0x8f   : > { %3904 = dma.done.wait (%p4687_p7), %s438_s14, 3072  }
  0x90   : > { %3906 = vsyncadd (%p4687_p7), %s438_s14, 4294964224  ;;  %s446_s21 = sand.u32 1, %s4041_s15   ;;  %s3030_s22 = sshll.u32 %s437_s16, 6 }
  0x91   : > { %s447_s25 = scalar_lea.sflag [#allocation6], %s446_s21  ;;  %s4236_s20 = scalar_lea.vmem [#allocation5], %s3030_s22 }
  0x92   : > { %3908 = dma.done.wait (%p4687_p7), %s447_s25, 5120  }
  0x93   : > { %3910 = vsyncadd (%p4687_p7), %s447_s25, 4294962176  ;;  %s3031_s29 = sshll.u32 %s437_s16, 8  ;;  %s465_s23 = scalar_lea.sflag [#allocation9], %s437_s16 }
  0x94   : > { %s4242_s24 = scalar_lea.vmem [#allocation7], %s3031_s29  ;;  %s4244_s3 = scalar_lea.vmem [#allocation8], %s3031_s29 }
  0x95   : > { %3912 = dma.done.wait (%p4687_p7), %s465_s23, 4096  }
  0x96   : > { %3914 = vsyncadd (%p4687_p7), %s465_s23, 4294963200  ;;  %p542_p9 = scmp.lt.s32.totalorder %s3933_s12, 1  ;;  %p3036_p4 = scmp.ne.s32.totalorder %s3933_s12, 0 }
  0x97   : > { %v557_v0 = vld [vmem:[%s4655_s0] sm:$0xff] (!%p3036_p4)  ;;  %v558_v1 = vld [vmem:[%s4655_s0 + $0x8] sm:$0xff] (!%p3036_p4) }
  0x98   : > { %s543_s28 = scalar_select %p542_p9, %s3933_s12, 1 }
  0x99   : > { %556 = sbr.rel (%p3036_p4) target bundleno = 469 (0x1d5), region = 76  ;;  %561 = vadd.xlane.f32.xlu0 (!%p3036_p4), %v557_v0  ;;  %v3037_v17 = vld [vmem:[%s4657_s2] ss:$0 sm:$0xff] (!%p3036_p4)  ;;  %v3038_v19 = vld [vmem:[%s4657_s2 + $0x1] ss:$0 sm:$0xff] (!%p3036_p4) }
  0x9a   : > { %s3165_s11 = sshll.u32 %s543_s28, 4  ;;  %s3035_s30 = sshll.u32 %s543_s28, 2 }
  0x9b   : > { %s4255_s4 = scalar_lea.vmem %s4662_s7, %s3165_s11  ;;  %s4260_s14 = scalar_lea.vmem %s4663_s8, %s3035_s30 }
  0x9d   : > { %563 = vadd.xlane.f32.xlu0 (!%p3036_p4), %v558_v1 }
 0x126   : > { %v562_v2 = vpop.xlane.xlu0 %561 }
 0x127   : > { %v566_v3 = vmul.f32 0.0078125, %v562_v2 }
 0x129   : > { %v568_v4 = vsub.f32 %v557_v0, %v566_v3 }
 0x12a   : > { %v564_v5 = vpop.xlane.xlu0 %563 }
 0x12b   : > { %v567_v6 = vmul.f32 0.0078125, %v564_v5  ;;  %v570_v7 = vmul.f32 %v568_v4, %v568_v4 }
 0x12d   : > { %v569_v8 = vsub.f32 %v558_v1, %v567_v6  ;;  %572 = vadd.xlane.f32.xlu1 %v570_v7 }
 0x12f   : > { %v571_v9 = vmul.f32 %v569_v8, %v569_v8 }
 0x131   : > { %574 = vadd.xlane.f32.xlu1 %v571_v9 }
 0x1ba   : > { %v573_v10 = vpop.xlane.xlu1 %572 }
 0x1bb   : > { %v576_v11 = vmul.f32 0.0078125, %v573_v10 }
 0x1bd   : > { %v578_v12 = vadd.f32 1e-05, %v576_v11 }
 0x1be   : > { %v575_v13 = vpop.xlane.xlu1 %574 }
 0x1bf   : > { %3505 = vrsqrt.f32 %v578_v12  ;;  %v577_v14 = vmul.f32 0.0078125, %v575_v13 }
 0x1c1   : > { %v579_v15 = vadd.f32 1e-05, %v577_v14 }
 0x1c3   : > { %3507 = vrsqrt.f32 %v579_v15 }
 0x1c9   : > { %v3506_v16 = vpop.eup %3505 }
 0x1ca   : > { %v582_v18 = vmul.f32 %v3506_v16, %v568_v4 }
 0x1cc   : > { %v588_v20 = vmul.f32 %v3037_v17, %v582_v18 }
 0x1cd   : > { %v3508_v21 = vpop.eup %3507 }
 0x1ce   : > { %v594_v22 = vadd.f32 %v3038_v19, %v588_v20  ;;  %v583_v23 = vmul.f32 %v3508_v21, %v569_v8 }
 0x1d0   : > { %596 = vst [vmem:[#allocation10] sm:$0xff] %v594_v22  ;;  %v589_v24 = vmul.f32 %v3037_v17, %v583_v23 }
 0x1d2   : > { %v595_v25 = vadd.f32 %v3038_v19, %v589_v24 }
 0x1d4   : > { %597 = vst [vmem:[#allocation10 + $0x8] sm:$0xff] %v595_v25 }
 0x1d5 PF: > { %v3554_v26 = vld [vmem:[%s4229_s26 + $0x4] ss:$12 sps:$4 sm:$0xff]   ;;  %v3556_v27 = vld [vmem:[%s4229_s26] ss:$12 sps:$4 sm:$0xff]   ;;  %v3953_v28 = vmov 0   ;;  %v3954_v29 = vmov 0.0   ;;  %v847_v55 = vlaneseq }
 0x1d6   : > { %795 = vmatprep.mubr.bf16.mxu0 %v3953_v28  ;;  %3263 = vmatprep.subr.bf16.mxu1 %v3954_v29  ;;  %v3557_v30 = vld [vmem:[%s4229_s26 + $0x1c] ss:$12 sps:$4 sm:$0xff]   ;;  %v3559_v31 = vld [vmem:[%s4229_s26 + $0x18] ss:$12 sps:$4 sm:$0xff]   ;;  %v3560_v32 = vld [vmem:[%s4229_s26 + $0x34] ss:$12 sps:$4 sm:$0xff]  }
 0x1d7   : > { %763 = vmatprep.subr.bf16.mxu0 %v3554_v26  ;;  %v3562_v33 = vld [vmem:[%s4229_s26 + $0x30] ss:$12 sps:$4 sm:$0xff]   ;;  %v3563_v34 = vld [vmem:[%s4229_s26 + $0x4c] ss:$12 sps:$4 sm:$0xff]   ;;  %v3565_v35 = vld [vmem:[%s4229_s26 + $0x48] ss:$12 sps:$4 sm:$0xff]  }
 0x1d8   : > { %764 = vmatpush1.bf16.msra.mxu0 %v3556_v27  ;;  %v3566_v36 = vld [vmem:[%s4229_s26 + $0x64] ss:$12 sps:$4 sm:$0xff]   ;;  %v3578_v37 = vld [vmem:[%s4229_s26 + $0x8] ss:$12 sps:$4 sm:$0xff]   ;;  %v3579_v38 = vld [vmem:[%s4229_s26 + $0x20] ss:$12 sps:$4 sm:$0xff]  }
 0x1d9   : > { %765 = vmatprep.subr.bf16.mxu0 %v3557_v30  ;;  %3264 = vmatpush3.bf16.msra.mxu1 %v3578_v37  ;;  %v3568_v39 = vld [vmem:[%s4229_s26 + $0x60] ss:$12 sps:$4 sm:$0xff]   ;;  %v3569_v40 = vld [vmem:[%s4229_s26 + $0x7c] ss:$12 sps:$4 sm:$0xff]   ;;  %v3571_v41 = vld [vmem:[%s4229_s26 + $0x78] ss:$12 sps:$4 sm:$0xff]  }
 0x1da   : > { %3265 = vmatprep.subr.bf16.mxu1 %v3954_v29  ;;  %v3572_v42 = vld [vmem:[%s4229_s26 + $0x94] ss:$12 sps:$4 sm:$0xff]   ;;  %v3580_v43 = vld [vmem:[%s4229_s26 + $0x38] ss:$12 sps:$4 sm:$0xff]   ;;  %v3581_v44 = vld [vmem:[%s4229_s26 + $0x50] ss:$12 sps:$4 sm:$0xff]  }
 0x1db   : > { %v3574_v45 = vld [vmem:[%s4229_s26 + $0x90] ss:$12 sps:$4 sm:$0xff]   ;;  %v3575_v46 = vld [vmem:[%s4229_s26 + $0xac] ss:$12 sps:$4 sm:$0xff]   ;;  %v3582_v47 = vld [vmem:[%s4229_s26 + $0x68] ss:$12 sps:$4 sm:$0xff]  }
 0x1dc   : > { %766 = vmatpush1.bf16.msra.mxu0 %v3559_v31  ;;  %v3577_v48 = vld [vmem:[%s4229_s26 + $0xa8] ss:$12 sps:$4 sm:$0xff]   ;;  %v598_v49 = vld [vmem:[#allocation10] sm:$0xff]  ;;  %v3585_v54 = vld [vmem:[%s4229_s26 + $0xb0] ss:$12 sps:$4 sm:$0xff]   ;;  %vm3955_vm0 = vmmov 0  }
 0x1dd   : > { %767 = vmatprep.subr.bf16.mxu0 %v3560_v32  ;;  %3266 = vmatpush3.bf16.msra.mxu1 %v3579_v38  ;;  %v599_v50 = vld [vmem:[#allocation10 + $0x8] sm:$0xff]  ;;  %v3584_v53 = vld [vmem:[%s4229_s26 + $0x98] ss:$12 sps:$4 sm:$0xff]   ;;  %v4316_v56 = vshrl.u32 %v847_v55, 7  ;;  %vm951_vm1 = vcmask 261120   ;;  %s3957_s11 = smov 96  }
 0x1de   : > { %3267 = vmatprep.subr.bf16.mxu1 %v3954_v29  ;;  %v3583_v51 = vld [vmem:[%s4229_s26 + $0x80] ss:$12 sps:$4 sm:$0xff]   ;;  %v600_v52 = vpack.c.bf16 %v599_v50, %v598_v49  ;;  %3279 = vmatprep.mubr.msk.bf16.mxu1 %vm3955_vm0, %v3954_v29  ;;  %s3956_s26 = smov 64   ;;  %s3958_s30 = smov 32   ;;  %vm1442_vm2 = vcmask 1043456   ;;  %vm1342_vm3 = vcmask 64512  }
 0x1df   : > { %v849_v57 = vsub.s32 0, %v4316_v56  ;;  %v4320_v58 = vld [vmem:[%s4255_s4] sm:$0xff]  ;;  %v857_v59 = vsub.s32 1, %v4316_v56  ;;  %p3440_p6 = scmp.eq.s32.totalorder %s4041_s15, 1 }
 0x1e0   : > { %768 = vmatpush1.bf16.msra.mxu0 %v3562_v33 }
 0x1e1   : > { %769 = vmatprep.subr.bf16.mxu0 %v3563_v34  ;;  %3268 = vmatpush3.bf16.msra.mxu1 %v3580_v43  ;;  %v850_v60 = vrot.slane %v4320_v58, %v849_v57  ;;  %v858_v61 = vrot.slane %v4320_v58, %v857_v59 }
 0x1e2   : > { %3269 = vmatprep.subr.bf16.mxu1 %v3954_v29 }
 0x1e4   : > { %770 = vmatpush1.bf16.msra.mxu0 %v3565_v35 }
 0x1e5   : > { %771 = vmatprep.subr.bf16.mxu0 %v3566_v36  ;;  %3270 = vmatpush3.bf16.msra.mxu1 %v3581_v44 }
 0x1e6   : > { %3271 = vmatprep.subr.bf16.mxu1 %v3954_v29 }
 0x1e8   : > { %772 = vmatpush1.bf16.msra.mxu0 %v3568_v39  ;;  %v863_v39 = vsub.s32 2, %v4316_v56 }
 0x1e9   : > { %773 = vmatprep.subr.bf16.mxu0 %v3569_v40  ;;  %3272 = vmatpush3.bf16.msra.mxu1 %v3582_v47 }
 0x1ea   : > { %3273 = vmatprep.subr.bf16.mxu1 %v3954_v29  ;;  %v864_v47 = vrot.slane %v4320_v58, %v863_v39 }
 0x1ec   : > { %774 = vmatpush1.bf16.msra.mxu0 %v3571_v41 }
 0x1ed   : > { %775 = vmatprep.subr.bf16.mxu0 %v3572_v42  ;;  %3274 = vmatpush3.bf16.msra.mxu1 %v3583_v51 }
 0x1ee   : > { %3275 = vmatprep.subr.bf16.mxu1 %v3954_v29 }
 0x1f0   : > { %776 = vmatpush1.bf16.msra.mxu0 %v3574_v45 }
 0x1f1   : > { %777 = vmatprep.subr.bf16.mxu0 %v3575_v46  ;;  %3276 = vmatpush3.bf16.msra.mxu1 %v3584_v53 }
 0x1f2   : > { %3277 = vmatprep.subr.bf16.mxu1 %v3954_v29 }
 0x1f4   : > { %778 = vmatpush1.bf16.msra.mxu0 %v3577_v48 }
 0x1f5   : > { %3283 = vmatprep.subr.bf16.mxu0 %v3954_v29  ;;  %3278 = vmatpush3.bf16.msra.mxu1 %v3585_v54 }
 0x1f6   : > { %3289 = vmatprep.subr.bf16.mxu1 %v3954_v29 }
 0x1f7   : > { %796 = vmatmul.mubr.bf16.vlgmr.msra.gmra.mrb[0].mxu0 %v600_v52 }
 0x1f8   : > { %3285 = vmatprep.mubr.msk.bf16.mxu0 %vm3955_vm0, %v3954_v29  ;;  %3280 = vmatmul.mubr.bf16.vlgmr.msra.gmra.mrb[0].mxu1 %v600_v52 }
 0x1f9   : > { %3291 = vmatprep.mubr.msk.bf16.mxu1 %vm3955_vm0, %v3954_v29 }
 0x2ca   : > { %v797_v62 = vpop.f32.mrb[0].mxu0 }
 0x2cb   : > { %v851_v63 = vadd.f32 %v850_v60, %v797_v62  ;;  %v799_v0 = vpop.f32.mrb[1].mxu0  ;;  %v840_v16 = vpop.f32.mrb[0].mxu1 }
 0x2cc   : > { %v859_v1 = vadd.f32 %v858_v61, %v799_v0  ;;  %v801_v2 = vpop.f32.mrb[2].mxu0  ;;  %v3281_v17 = vpop.f32.mrb[1].mxu1  ;;  %v4363_v52 = vadd.f32 %v864_v47, %v840_v16 }
 0x2cd   : > { %v852_v3 = vadd.f32 %v850_v60, %v801_v2  ;;  %v803_v4 = vpop.f32.mrb[3].mxu0  ;;  %v853_v7 = vmul.f32 0.17677669, %v851_v63  ;;  %v843_v18 = vpop.f32.mrb[2].mxu1 }
 0x2ce   : > { %v860_v5 = vadd.f32 %v858_v61, %v803_v4  ;;  %v915_v6 = vpack.c.bf16 %v859_v1, %v859_v1  ;;  %v3282_v19 = vpop.f32.mrb[3].mxu1  ;;  %v4365_v55 = vadd.f32 %v864_v47, %v843_v18  ;;  %v943_v63 = vpack.c.bf16 %v4363_v52, %v4363_v52 }
 0x2cf   : > { %v854_v8 = vmul.f32 0.17677669, %v852_v3  ;;  %v887_v14 = vpack.c.bf16 %v853_v7, %v853_v7 }
 0x2d0   : > { %v956_v9 = vsel %vm951_vm1, %v915_v6, 0  ;;  %v3519_v10 = vpack.i.bf16 %v860_v5, %v859_v1  ;;  %v916_v11 = vpack.c.bf16 %v860_v5, %v860_v5  ;;  %v944_v1 = vpack.c.bf16 %v4365_v55, %v4365_v55  ;;  %v3071_v6 = vld [vmem:[%s4656_s1] ss:$0 sm:$0xff] }
 0x2d1   : > { %3284 = vmatpush3.bf16.xpose.msra.mxu0 %v956_v9  ;;  %v3524_v12 = vpack.i.bf16 %v854_v8, %v853_v7  ;;  %v888_v15 = vpack.c.bf16 %v854_v8, %v854_v8  ;;  %v1444_v3 = vsel %vm1442_vm2, %v943_v63, 0 }
 0x2d2   : > { %3520 = vrot.lane.b32.xlu1 %v3519_v10, %s3956_s26  ;;  %3510 = vrot.lane.b32.xlu0 %v3519_v10, %s3957_s11  ;;  %v1002_v13 = vsel %vm951_vm1, %v916_v11, 0  ;;  %v1490_v5 = vsel %vm1442_vm2, %v944_v1, 0 }
 0x2d3   : > { %3290 = vmatpush3.bf16.xpose.msra.mxu1 %v1002_v13  ;;  %3295 = vmatprep.subr.bf16.mxu0 %v3954_v29 }
 0x2d4   : > { %3301 = vmatprep.subr.bf16.mxu1 %v3954_v29 }
 0x2d6   : > { %3525 = vrot.lane.b32.xlu1 %v3524_v12, %s3956_s26  ;;  %3515 = vrot.lane.b32.xlu0 %v3524_v12, %s3957_s11 }
 0x2d8   : > { %3286 = vmatmul.mubr.msk.bf16.vlgmr.msra.gmra.mrb[4].mxu0 %vm951_vm1, %v887_v14 }
 0x2d9   : > { %3297 = vmatprep.mubr.msk.bf16.mxu0 %vm3955_vm0, %v3954_v29 }
 0x2da   : > { %3535 = vrot.lane.b32.xlu1 %v3524_v12, %s3958_s30  ;;  %3530 = vrot.lane.b32.xlu0 %v3519_v10, %s3958_s30  ;;  %v3072_v10 = vld [vmem:[%s4656_s1 + $0x1] ss:$0 sm:$0xff] }
 0x2db   : > { %3292 = vmatmul.mubr.msk.bf16.vlgmr.msra.gmra.mrb[4].mxu1 %vm951_vm1, %v888_v15 }
 0x2dc   : > { %3303 = vmatprep.mubr.msk.bf16.mxu1 %vm3955_vm0, %v3954_v29 }
 0x344   : > { %v3511_v20 = vpop.permute.xlu0 %3510  ;;  %v3521_v23 = vpop.permute.xlu1 %3520 }
 0x345   : > { %v3513_v21 = vunpack.i.h.bf16 %v3511_v20  ;;  %v3512_v22 = vunpack.i.l.bf16 %v3511_v20  ;;  %v3522_v27 = vunpack.i.l.bf16 %v3521_v23  ;;  %v3523_v32 = vunpack.i.h.bf16 %v3521_v23 }
 0x347   : > { %v918_v24 = vpack.c.bf16 %v3513_v21, %v3513_v21  ;;  %v917_v25 = vpack.c.bf16 %v3512_v22, %v3512_v22  ;;  %v919_v35 = vpack.c.bf16 %v3522_v27, %v3522_v27  ;;  %v920_v36 = vpack.c.bf16 %v3523_v32, %v3523_v32 }
 0x348   : > { %v3516_v26 = vpop.permute.xlu0 %3515  ;;  %v3526_v40 = vpop.permute.xlu1 %3525 }
 0x349   : > { %v1048_v30 = vsel %vm951_vm1, %v917_v25, 0  ;;  %v1094_v31 = vsel %vm951_vm1, %v918_v24, 0  ;;  %v3517_v33 = vunpack.i.l.bf16 %v3516_v26  ;;  %v3518_v34 = vunpack.i.h.bf16 %v3516_v26 }
 0x34a   : > { %3296 = vmatpush3.bf16.xpose.msra.mxu0 %v1048_v30  ;;  %3302 = vmatpush3.bf16.xpose.msra.mxu1 %v1094_v31  ;;  %v1140_v43 = vsel %vm951_vm1, %v919_v35, 0  ;;  %v1186_v45 = vsel %vm951_vm1, %v920_v36, 0  ;;  %v3527_v46 = vunpack.i.l.bf16 %v3526_v40  ;;  %v3528_v48 = vunpack.i.h.bf16 %v3526_v40 }
 0x34b   : > { %3307 = vmatprep.subr.bf16.mxu0 %v3954_v29  ;;  %3313 = vmatprep.subr.bf16.mxu1 %v3954_v29  ;;  %v889_v38 = vpack.c.bf16 %v3517_v33, %v3517_v33  ;;  %v890_v41 = vpack.c.bf16 %v3518_v34, %v3518_v34 }
 0x34c   : > { %v3531_v37 = vpop.permute.xlu0 %3530  ;;  %v891_v51 = vpack.c.bf16 %v3527_v46, %v3527_v46  ;;  %v892_v53 = vpack.c.bf16 %v3528_v48, %v3528_v48  ;;  %v3536_v54 = vpop.permute.xlu1 %3535 }
 0x34d   : > { %v3532_v42 = vunpack.i.l.bf16 %v3531_v37  ;;  %v3533_v44 = vunpack.i.h.bf16 %v3531_v37  ;;  %v3537_v62 = vunpack.i.l.bf16 %v3536_v54  ;;  %v3538_v0 = vunpack.i.h.bf16 %v3536_v54 }
 0x34f   : > { %v921_v49 = vpack.c.bf16 %v3532_v42, %v3532_v42  ;;  %v922_v50 = vpack.c.bf16 %v3533_v44, %v3533_v44  ;;  %v893_v2 = vpack.c.bf16 %v3537_v62, %v3537_v62  ;;  %v894_v4 = vpack.c.bf16 %v3538_v0, %v3538_v0 }
 0x351   : > { %3298 = vmatmul.mubr.msk.bf16.vlgmr.msra.gmra.mrb[8].mxu0 %vm951_vm1, %v889_v38  ;;  %3304 = vmatmul.mubr.msk.bf16.vlgmr.msra.gmra.mrb[8].mxu1 %vm951_vm1, %v890_v41  ;;  %v1232_v60 = vsel %vm951_vm1, %v921_v49, 0  ;;  %v1278_v61 = vsel %vm951_vm1, %v922_v50, 0 }
 0x352   : > { %3308 = vmatpush3.bf16.xpose.msra.mxu0 %v1140_v43  ;;  %3314 = vmatpush3.bf16.xpose.msra.mxu1 %v1186_v45 }
 0x353   : > { %3309 = vmatprep.mubr.msk.bf16.mxu0 %vm3955_vm0, %v3954_v29  ;;  %3315 = vmatprep.mubr.msk.bf16.mxu1 %vm3955_vm0, %v3954_v29 }
 0x354   : > { %3319 = vmatprep.subr.bf16.mxu0 %v3954_v29  ;;  %3325 = vmatprep.subr.bf16.mxu1 %v3954_v29 }
 0x359   : > { %3310 = vmatmul.mubr.msk.bf16.vlgmr.msra.gmra.mrb[12].mxu0 %vm951_vm1, %v891_v51  ;;  %3316 = vmatmul.mubr.msk.bf16.vlgmr.msra.gmra.mrb[12].mxu1 %vm951_vm1, %v892_v53 }
 0x35a   : > { %3320 = vmatpush3.bf16.xpose.msra.mxu0 %v1232_v60  ;;  %3326 = vmatpush3.bf16.xpose.msra.mxu1 %v1278_v61 }
 0x35b   : > { %3321 = vmatprep.mubr.msk.bf16.mxu0 %vm3955_vm0, %v3954_v29  ;;  %3327 = vmatprep.mubr.msk.bf16.mxu1 %vm3955_vm0, %v3954_v29 }
 0x35c   : > { %3331 = vmatprep.subr.bf16.mxu0 %v3954_v29  ;;  %3337 = vmatprep.subr.bf16.mxu1 %v3954_v29 }
 0x361   : > { %3322 = vmatmul.mubr.msk.bf16.vlgmr.msra.gmra.mrb[16].mxu0 %vm951_vm1, %v893_v2  ;;  %3328 = vmatmul.mubr.msk.bf16.vlgmr.msra.gmra.mrb[16].mxu1 %vm951_vm1, %v894_v4  ;;  %v4410_v4 = vpack.i.bf16 %v4365_v55, %v4363_v52 }
 0x362   : > { %3332 = vmatpush3.bf16.msra.mxu0 %v1444_v3  ;;  %3338 = vmatpush3.bf16.msra.mxu1 %v1490_v5 }
 0x363   : > { %3339 = vmatprep.mubr.msk.bf16.mxu1 %vm3955_vm0, %v3954_v29  ;;  %3349 = vmatprep.subr.bf16.mxu1 %v3954_v29 }
 0x364   : > { %3333 = vmatprep.mubr.msk.bf16.mxu0 %vm3955_vm0, %v3954_v29  ;;  %3343 = vmatprep.subr.bf16.mxu0 %v3954_v29 }
 0x3ab   : > { %v992_v7 = vpop.f32.mrb[4].mxu0 }
 0x3ac   : > { %v4394_v8 = vadd.f32 %v3071_v6, %v992_v7  ;;  %v3287_v9 = vpop.f32.mrb[5].mxu0 }
 0x3ad   : > { %v995_v11 = vpop.f32.mrb[6].mxu0 }
 0x3ae   : > { %v1038_v12 = vpop.f32.mrb[4].mxu1  ;;  %v3288_v13 = vpop.f32.mrb[7].mxu0  ;;  %v1343_v14 = vsel %vm1342_vm3, %v4394_v8, -inf }
 0x3af   : > { %v1335_v15 = vadd.f32 %v3072_v10, %v1038_v12  ;;  %v3293_v16 = vpop.f32.mrb[5].mxu1  ;;  %1344 = vmax.xlane.f32.xlu0 %v1343_v14 }
 0x3b0   : > { %v1041_v17 = vpop.f32.mrb[6].mxu1 }
 0x3b1   : > { %v3294_v18 = vpop.f32.mrb[7].mxu1  ;;  %v1346_v19 = vsel %vm1342_vm3, %v1335_v15, -inf }
 0x3b2   : > { %1347 = vmax.xlane.f32.xlu1 %v1346_v19 }
 0x424   : > { %v1084_v20 = vpop.f32.mrb[8].mxu0  ;;  %v1130_v22 = vpop.f32.mrb[8].mxu1 }
 0x425   : > { %v1336_v21 = vadd.f32 %v3071_v6, %v1084_v20  ;;  %v3299_v23 = vpop.f32.mrb[9].mxu0  ;;  %v3305_v24 = vpop.f32.mrb[9].mxu1  ;;  %v1337_v26 = vadd.f32 %v3072_v10, %v1130_v22 }
 0x426   : > { %v1087_v25 = vpop.f32.mrb[10].mxu0  ;;  %v1133_v27 = vpop.f32.mrb[10].mxu1 }
 0x427   : > { %v3300_v30 = vpop.f32.mrb[11].mxu0  ;;  %v1349_v31 = vsel %vm1342_vm3, %v1336_v21, -inf  ;;  %v3306_v32 = vpop.f32.mrb[11].mxu1  ;;  %v1352_v33 = vsel %vm1342_vm3, %v1337_v26, -inf }
 0x428   : > { %1350 = vmax.xlane.f32.xlu0 %v1349_v31 }
 0x42c   : > { %v1176_v34 = vpop.f32.mrb[12].mxu0  ;;  %1353 = vmax.xlane.f32.xlu0 %v1352_v33  ;;  %v1222_v36 = vpop.f32.mrb[12].mxu1 }
 0x42d   : > { %v1338_v35 = vadd.f32 %v3071_v6, %v1176_v34  ;;  %v3311_v37 = vpop.f32.mrb[13].mxu0  ;;  %v1339_v38 = vadd.f32 %v3072_v10, %v1222_v36  ;;  %v3317_v40 = vpop.f32.mrb[13].mxu1 }
 0x42e   : > { %v1179_v41 = vpop.f32.mrb[14].mxu0  ;;  %v1225_v42 = vpop.f32.mrb[14].mxu1 }
 0x42f   : > { %v3312_v43 = vpop.f32.mrb[15].mxu0  ;;  %v1355_v44 = vsel %vm1342_vm3, %v1338_v35, -inf  ;;  %v3318_v45 = vpop.f32.mrb[15].mxu1  ;;  %v1358_v46 = vsel %vm1342_vm3, %v1339_v38, -inf }
 0x430   : > { %1356 = vmax.xlane.f32.xlu1 %v1355_v44  ;;  %1359 = vmax.xlane.f32.xlu0 %v1358_v46 }
 0x434   : > { %v1268_v47 = vpop.f32.mrb[16].mxu0  ;;  %v1314_v49 = vpop.f32.mrb[16].mxu1 }
 0x435   : > { %v1340_v48 = vadd.f32 %v3071_v6, %v1268_v47  ;;  %v3323_v50 = vpop.f32.mrb[17].mxu0  ;;  %v1341_v51 = vadd.f32 %v3072_v10, %v1314_v49  ;;  %v3329_v53 = vpop.f32.mrb[17].mxu1 }
 0x436   : > { %v1271_v54 = vpop.f32.mrb[18].mxu0  ;;  %v1317_v60 = vpop.f32.mrb[18].mxu1 }
 0x437   : > { %v3324_v61 = vpop.f32.mrb[19].mxu0  ;;  %v1361_v62 = vsel %vm1342_vm3, %v1340_v48, -inf  ;;  %v3330_v63 = vpop.f32.mrb[19].mxu1  ;;  %v1364_v0 = vsel %vm1342_vm3, %v1341_v51, -inf }
 0x438   : > { %1362 = vmax.xlane.f32.xlu1 %v1361_v62  ;;  %1365 = vmax.xlane.f32.xlu0 %v1364_v0 }
 0x43c   : > { %v1345_v7 = vpop.xlane.xlu0 %1344 }
 0x43d   : > { %v1367_v9 = vsub.f32 %v4394_v8, %v1345_v7 }
 0x43f   : > { %v1348_v1 = vpop.xlane.xlu1 %1347  ;;  %v1375_v10 = vmul.f32 1.442695, %v1367_v9 }
 0x440   : > { %v1368_v2 = vsub.f32 %v1335_v15, %v1348_v1 }
 0x442   : > { %v1377_v3 = vmul.f32 1.442695, %v1368_v2 }
 0x444   : > { %3674 = vpow2.f32 %v1377_v3 }
 0x445   : > { %3676 = vpow2.f32 %v1375_v10 }
 0x449   : > { %3540 = vrot.lane.b32.xlu1 %v4410_v4, %s3957_s11 }
 0x44e   : > { %v3675_v5 = vpop.eup %3674 }
 0x44f   : > { %v1394_v6 = vsel %vm1342_vm3, %v3675_v5, 0.0  ;;  %v4416_v11 = vpop.eup %3676 }
 0x450   : > { %1395 = vadd.xlane.f32.xlu0 %v1394_v6  ;;  %v1391_v12 = vsel %vm1342_vm3, %v4416_v11, 0.0 }
 0x46d   : > { %1392 = vadd.xlane.f32.xlu1 %v1391_v12 }
 0x4b5   : > { %v1351_v52 = vpop.xlane.xlu0 %1350 }
 0x4b6   : > { %v1369_v55 = vsub.f32 %v1336_v21, %v1351_v52 }
 0x4b8   : > { %v1379_v13 = vmul.f32 1.442695, %v1369_v55 }
 0x4b9   : > { %v1354_v14 = vpop.xlane.xlu0 %1353 }
 0x4ba   : > { %3678 = vpow2.f32 %v1379_v13  ;;  %v1370_v15 = vsub.f32 %v1337_v26, %v1354_v14 }
 0x4bc   : > { %v1381_v16 = vmul.f32 1.442695, %v1370_v15 }
 0x4bd   : > { %v1357_v17 = vpop.xlane.xlu1 %1356  ;;  %v1360_v19 = vpop.xlane.xlu0 %1359 }
 0x4be   : > { %3680 = vpow2.f32 %v1381_v16  ;;  %v1371_v18 = vsub.f32 %v1338_v35, %v1357_v17  ;;  %v1372_v8 = vsub.f32 %v1339_v38, %v1360_v19 }
 0x4c0   : > { %v1383_v20 = vmul.f32 1.442695, %v1371_v18  ;;  %v1385_v22 = vmul.f32 1.442695, %v1372_v8 }
 0x4c2   : > { %3682 = vpow2.f32 %v1383_v20 }
 0x4c3   : > { %3684 = vpow2.f32 %v1385_v22 }
 0x4c4   : > { %v3679_v23 = vpop.eup %3678 }
 0x4c5   : > { %v1363_v24 = vpop.xlane.xlu1 %1362  ;;  %v1397_v25 = vsel %vm1342_vm3, %v3679_v23, 0.0  ;;  %v1366_v21 = vpop.xlane.xlu0 %1365 }
 0x4c6   : > { %v1373_v27 = vsub.f32 %v1340_v48, %v1363_v24  ;;  %1398 = vadd.xlane.f32.xlu1 %v1397_v25  ;;  %v1374_v30 = vsub.f32 %v1341_v51, %v1366_v21 }
 0x4c8   : > { %v3681_v31 = vpop.eup %3680  ;;  %v1387_v26 = vmul.f32 1.442695, %v1373_v27  ;;  %v1389_v32 = vmul.f32 1.442695, %v1374_v30 }
 0x4c9   : > { %v1400_v33 = vsel %vm1342_vm3, %v3681_v31, 0.0  ;;  %v3541_v44 = vpop.permute.xlu1 %3540 }
 0x4ca   : > { %3686 = vpow2.f32 %v1387_v26  ;;  %1401 = vadd.xlane.f32.xlu0 %v1400_v33  ;;  %v3543_v45 = vunpack.i.h.bf16 %v3541_v44  ;;  %v3542_v53 = vunpack.i.l.bf16 %v3541_v44 }
 0x4cb   : > { %3688 = vpow2.f32 %v1389_v32 }
 0x4cc   : > { %v4422_v34 = vpop.eup %3682  ;;  %v946_v47 = vpack.c.bf16 %v3543_v45, %v3543_v45  ;;  %v945_v60 = vpack.c.bf16 %v3542_v53, %v3542_v53 }
 0x4cd   : > { %v4424_v35 = vpop.eup %3684  ;;  %v1403_v36 = vsel %vm1342_vm3, %v4422_v34, 0.0 }
 0x4ce   : > { %1404 = vadd.xlane.f32.xlu1 %v1403_v36  ;;  %v1406_v37 = vsel %vm1342_vm3, %v4424_v35, 0.0  ;;  %v1582_v50 = vsel %vm1442_vm2, %v946_v47, 0  ;;  %v1536_v63 = vsel %vm1442_vm2, %v945_v60, 0  ;;  %v3586_v36 = vld [vmem:[%s4236_s20] sm:$0xff]  }
 0x4cf   : > { %1407 = vadd.xlane.f32.xlu0 %v1406_v37 }
 0x4d4   : > { %v4430_v38 = vpop.eup %3686 }
 0x4d5   : > { %v4432_v40 = vpop.eup %3688  ;;  %v1409_v41 = vsel %vm1342_vm3, %v4430_v38, 0.0 }
 0x4d6   : > { %1410 = vadd.xlane.f32.xlu1 %v1409_v41  ;;  %v1412_v42 = vsel %vm1342_vm3, %v4432_v40, 0.0 }
 0x4d7   : > { %1413 = vadd.xlane.f32.xlu0 %v1412_v42  ;;  %v3589_v42 = vld [vmem:[%s4236_s20 + $0x18] sm:$0xff]  }
 0x4dd   : > { %v1396_v43 = vpop.xlane.xlu0 %1395 }
 0x4de   : > { %3690 = vrcp.f32 %v1396_v43 }
 0x4e7   : > { %3550 = vrot.lane.b32.xlu1 %v4410_v4, %s3958_s30 }
 0x4e8   : > { %v3691_v46 = vpop.eup %3690 }
 0x4e9   : > { %v1424_v48 = vmul.f32 %v3691_v46, %v3675_v5 }
 0x4eb   : > { %v1432_v49 = vpack.c.bf16 %v1424_v48, %v1424_v48  ;;  %v3592_v48 = vld [vmem:[%s4236_s20 + $0x30] sm:$0xff]  }
 0x4ed   : > { %3340 = vmatmul.mubr.msk.bf16.vlgmr.msra.gmra.mrb[20].mxu1 %vm1342_vm3, %v1432_v49  ;;  %3545 = vrot.lane.b32.xlu0 %v4410_v4, %s3956_s26 }
 0x4ee   : > { %3350 = vmatpush3.bf16.msra.mxu1 %v1582_v50  ;;  %3351 = vmatprep.mubr.msk.bf16.mxu1 %vm3955_vm0, %v3954_v29 }
 0x4ef   : > { %3361 = vmatprep.subr.bf16.mxu1 %v3954_v29 }
 0x4fa   : > { %v1393_v51 = vpop.xlane.xlu1 %1392 }
 0x4fb   : > { %3692 = vrcp.f32 %v1393_v51 }
 0x505   : > { %v3693_v54 = vpop.eup %3692 }
 0x506   : > { %v1423_v61 = vmul.f32 %v3693_v54, %v4416_v11  ;;  %v3593_v54 = vld [vmem:[%s4236_s20 + $0x38] sm:$0xff]  }
 0x508   : > { %v1431_v62 = vpack.c.bf16 %v1423_v61, %v1423_v61 }
 0x50a   : > { %3334 = vmatmul.mubr.msk.bf16.vlgmr.msra.gmra.mrb[20].mxu0 %vm1342_vm3, %v1431_v62 }
 0x50b   : > { %3344 = vmatpush3.bf16.msra.mxu0 %v1536_v63  ;;  %3345 = vmatprep.mubr.msk.bf16.mxu0 %vm3955_vm0, %v3954_v29 }
 0x50c   : > { %3355 = vmatprep.subr.bf16.mxu0 %v3954_v29 }
 0x553   : > { %v1399_v0 = vpop.xlane.xlu1 %1398 }
 0x554   : > { %3694 = vrcp.f32 %v1399_v0 }
 0x557   : > { %v1402_v1 = vpop.xlane.xlu0 %1401 }
 0x558   : > { %3696 = vrcp.f32 %v1402_v1  ;;  %v3590_v1 = vld [vmem:[%s4236_s20 + $0x20] sm:$0xff]  }
 0x55b   : > { %v1405_v2 = vpop.xlane.xlu1 %1404 }
 0x55c   : > { %v1408_v3 = vpop.xlane.xlu0 %1407  ;;  %3698 = vrcp.f32 %v1405_v2 }
 0x55d   : > { %3700 = vrcp.f32 %v1408_v3 }
 0x55e   : > { %v3695_v4 = vpop.eup %3694 }
 0x55f   : > { %v1425_v5 = vmul.f32 %v3695_v4, %v3679_v23 }
 0x561   : > { %v1433_v6 = vpack.c.bf16 %v1425_v5, %v1425_v5 }
 0x562   : > { %v3697_v7 = vpop.eup %3696 }
 0x563   : > { %v1426_v9 = vmul.f32 %v3697_v7, %v3681_v31  ;;  %v1411_v10 = vpop.xlane.xlu1 %1410  ;;  %3346 = vmatmul.mubr.msk.bf16.vlgmr.msra.gmra.mrb[24].mxu0 %vm1342_vm3, %v1433_v6  ;;  %v3591_v6 = vld [vmem:[%s4236_s20 + $0x28] sm:$0xff]  }
 0x564   : > { %v1414_v11 = vpop.xlane.xlu0 %1413  ;;  %3357 = vmatprep.mubr.msk.bf16.mxu0 %vm3955_vm0, %v3954_v29  ;;  %3702 = vrcp.f32 %v1411_v10 }
 0x565   : > { %v1434_v12 = vpack.c.bf16 %v1426_v9, %v1426_v9  ;;  %3704 = vrcp.f32 %v1414_v11 }
 0x566   : > { %v3699_v52 = vpop.eup %3698 }
 0x567   : > { %v3551_v55 = vpop.permute.xlu1 %3550  ;;  %3352 = vmatmul.mubr.msk.bf16.vlgmr.msra.gmra.mrb[24].mxu1 %vm1342_vm3, %v1434_v12  ;;  %v3701_v13 = vpop.eup %3700  ;;  %v1427_v19 = vmul.f32 %v3699_v52, %v4422_v34 }
 0x568   : > { %v3546_v14 = vpop.permute.xlu0 %3545  ;;  %3363 = vmatprep.mubr.msk.bf16.mxu1 %vm3955_vm0, %v3954_v29  ;;  %v3553_v15 = vunpack.i.h.bf16 %v3551_v55  ;;  %v3552_v16 = vunpack.i.l.bf16 %v3551_v55  ;;  %v1428_v8 = vmul.f32 %v3701_v13, %v4424_v35 }
 0x569   : > { %v3548_v17 = vunpack.i.h.bf16 %v3546_v14  ;;  %v3547_v18 = vunpack.i.l.bf16 %v3546_v14  ;;  %v1435_v30 = vpack.c.bf16 %v1427_v19, %v1427_v19 }
 0x56a   : > { %v950_v23 = vpack.c.bf16 %v3553_v15, %v3553_v15  ;;  %v949_v24 = vpack.c.bf16 %v3552_v16, %v3552_v16  ;;  %v1436_v31 = vpack.c.bf16 %v1428_v8, %v1428_v8 }
 0x56b   : > { %v948_v20 = vpack.c.bf16 %v3548_v17, %v3548_v17  ;;  %v947_v22 = vpack.c.bf16 %v3547_v18, %v3547_v18 }
 0x56c   : > { %v1720_v32 = vsel %vm1442_vm2, %v949_v24, 0  ;;  %v1766_v33 = vsel %vm1442_vm2, %v950_v23, 0 }
 0x56d   : > { %v1628_v25 = vsel %vm1442_vm2, %v947_v22, 0  ;;  %v1674_v27 = vsel %vm1442_vm2, %v948_v20, 0 }
 0x56e   : > { %3356 = vmatpush3.bf16.msra.mxu0 %v1628_v25  ;;  %3362 = vmatpush3.bf16.msra.mxu1 %v1674_v27  ;;  %v3703_v21 = vpop.eup %3702 }
 0x56f   : > { %3367 = vmatprep.subr.bf16.mxu0 %v3954_v29  ;;  %3373 = vmatprep.subr.bf16.mxu1 %v3954_v29  ;;  %v3705_v26 = vpop.eup %3704  ;;  %v1429_v34 = vmul.f32 %v3703_v21, %v4430_v38  ;;  %v3587_v38 = vld [vmem:[%s4236_s20 + $0x8] sm:$0xff]  }
 0x570   : > { %v1430_v35 = vmul.f32 %v3705_v26, %v4432_v40  ;;  %v3588_v40 = vld [vmem:[%s4236_s20 + $0x10] sm:$0xff]   ;;  %s3959_s20 = smov [#allocation10]  }
 0x571   : > { %3358 = vmatmul.mubr.msk.bf16.vlgmr.msra.gmra.mrb[28].mxu0 %vm1342_vm3, %v1435_v30  ;;  %3364 = vmatmul.mubr.msk.bf16.vlgmr.msra.gmra.mrb[28].mxu1 %vm1342_vm3, %v1436_v31  ;;  %v1437_v37 = vpack.c.bf16 %v1429_v34, %v1429_v34 }
 0x572   : > { %3368 = vmatpush3.bf16.msra.mxu0 %v1720_v32  ;;  %3374 = vmatpush3.bf16.msra.mxu1 %v1766_v33  ;;  %v1438_v41 = vpack.c.bf16 %v1430_v35, %v1430_v35 }
 0x573   : > { %3369 = vmatprep.mubr.msk.bf16.mxu0 %vm3955_vm0, %v3954_v29  ;;  %3375 = vmatprep.mubr.msk.bf16.mxu1 %vm3955_vm0, %v3954_v29 }
 0x574   : > { %3387 = vmatprep.subr.bf16.mxu1 %v3954_v29  ;;  %3379 = vmatprep.subr.bf16.mxu0 %v3954_v29 }
 0x579   : > { %3370 = vmatmul.mubr.msk.bf16.vlgmr.msra.gmra.mrb[32].mxu0 %vm1342_vm3, %v1437_v37  ;;  %3376 = vmatmul.mubr.msk.bf16.vlgmr.msra.gmra.mrb[32].mxu1 %vm1342_vm3, %v1438_v41 }
 0x57a   : > { %3388 = vmatpush3.bf16.msra.mxu1 %v3586_v36  ;;  %3391 = vmatprep.mubr.msk.bf16.mxu1 %vm3955_vm0, %v3954_v29 }
 0x57b   : > { %3389 = vmatprep.subr.bf16.mxu1 %v3954_v29  ;;  %3383 = vmatprep.mubr.msk.bf16.mxu0 %vm3955_vm0, %v3954_v29 }
 0x57c   : > { %3380 = vmatpush3.bf16.msra.mxu0 %v3588_v40  ;;  %v2058_v40 = vsub.s32 3, %v4316_v56 }
 0x57d   : > { %3381 = vmatprep.subr.bf16.mxu0 %v3954_v29 }
 0x57e   : > { %3390 = vmatpush3.bf16.msra.mxu1 %v3587_v38 }
 0x57f   : > { %3403 = vmatprep.subr.bf16.mxu1 %v3954_v29 }
 0x580   : > { %3382 = vmatpush3.bf16.msra.mxu0 %v3589_v42 }
 0x581   : > { %3395 = vmatprep.subr.bf16.mxu0 %v3954_v29 }
 0x5c0   : > { %v1526_v43 = vpop.f32.mrb[20].mxu1 }
 0x5c1   : > { %v3341_v44 = vpop.f32.mrb[21].mxu1 }
 0x5c2   : > { %v1529_v45 = vpop.f32.mrb[22].mxu1 }
 0x5c3   : > { %v3342_v46 = vpop.f32.mrb[23].mxu1 }
 0x5dd   : > { %v1480_v47 = vpop.f32.mrb[20].mxu0 }
 0x5de   : > { %v1824_v49 = vpack.c.bf16 %v1526_v43, %v1480_v47  ;;  %v3335_v50 = vpop.f32.mrb[21].mxu0 }
 0x5df   : > { %v1483_v51 = vpop.f32.mrb[22].mxu0  ;;  %v3730_v50 = vld [vmem:[#allocation10] sm:$0xff] }
 0x5e0   : > { %v3336_v53 = vpop.f32.mrb[23].mxu0  ;;  %3392 = vmatmul.mubr.msk.bf16.vlgmr.msra.gmra.mrb[36].mxu1 %vm951_vm1, %v1824_v49 }
 0x5e1   : > { %3404 = vmatpush3.bf16.msra.mxu1 %v3592_v48  ;;  %3407 = vmatprep.mubr.msk.bf16.mxu1 %vm3955_vm0, %v3954_v29  ;;  %v3731_v53 = vld [vmem:[#allocation10 + $0x8] sm:$0xff] }
 0x5e2   : > { %3405 = vmatprep.subr.bf16.mxu1 %v3954_v29 }
 0x5e5   : > { %3406 = vmatpush3.bf16.msra.mxu1 %v3593_v54  ;;  %v3594_v54 = vld [vmem:[%s4242_s24] ss:$16 sps:$4 sm:$0xff]  }
 0x636   : > { %v1572_v60 = vpop.f32.mrb[24].mxu0 }
 0x637   : > { %v3347_v61 = vpop.f32.mrb[25].mxu0 }
 0x638   : > { %v1575_v62 = vpop.f32.mrb[26].mxu0  ;;  %v3597_v61 = vld [vmem:[%s4242_s24 + $0x8] ss:$16 sps:$4 sm:$0xff]  }
 0x639   : > { %v3348_v63 = vpop.f32.mrb[27].mxu0  ;;  %v3599_v62 = vld [vmem:[%s4242_s24 + $0xc] ss:$16 sps:$4 sm:$0xff]  }
 0x63a   : > { %v1618_v0 = vpop.f32.mrb[24].mxu1  ;;  %v3602_v63 = vld [vmem:[%s4242_s24 + $0x24] ss:$16 sps:$4 sm:$0xff]   ;;  %2357 = vmatprep.subr.bf16.mxu1 %v3599_v62 }
 0x63b   : > { %v1825_v2 = vpack.c.bf16 %v1618_v0, %v1572_v60  ;;  %v3353_v3 = vpop.f32.mrb[25].mxu1  ;;  %v3596_v60 = vld [vmem:[%s4242_s24 + $0x4] ss:$16 sps:$4 sm:$0xff]   ;;  %v3605_v0 = vld [vmem:[%s4242_s24 + $0x2c] ss:$16 sps:$4 sm:$0xff]  }
 0x63c   : > { %v1621_v4 = vpop.f32.mrb[26].mxu1  ;;  %v3645_v62 = vld [vmem:[%s4244_s3 + $0x80] sm:$0xff]  }
 0x63d   : > { %v3354_v5 = vpop.f32.mrb[27].mxu1  ;;  %3384 = vmatmul.mubr.msk.bf16.vlgmr.msra.gmra.mrb[36].mxu0 %vm951_vm1, %v1825_v2  ;;  %v3603_v2 = vld [vmem:[%s4242_s24 + $0x28] ss:$16 sps:$4 sm:$0xff]  }
 0x63e   : > { %3396 = vmatpush3.bf16.msra.mxu0 %v3590_v1  ;;  %3399 = vmatprep.mubr.msk.bf16.mxu0 %vm3955_vm0, %v3954_v29  ;;  %v3600_v1 = vld [vmem:[%s4242_s24 + $0x20] ss:$16 sps:$4 sm:$0xff]  }
 0x63f   : > { %3397 = vmatprep.subr.bf16.mxu0 %v3954_v29 }
 0x642   : > { %3398 = vmatpush3.bf16.msra.mxu0 %v3591_v6 }
 0x643   : > { %2314 = vmatprep.subr.bf16.mxu0 %v3596_v60 }
 0x644   : > { %v1664_v7 = vpop.f32.mrb[28].mxu0  ;;  %v1710_v9 = vpop.f32.mrb[28].mxu1 }
 0x645   : > { %v1938_v10 = vpack.c.bf16 %v1710_v9, %v1664_v7  ;;  %v3359_v11 = vpop.f32.mrb[29].mxu0  ;;  %v3365_v12 = vpop.f32.mrb[29].mxu1 }
 0x646   : > { %v1667_v52 = vpop.f32.mrb[30].mxu0  ;;  %v1713_v55 = vpop.f32.mrb[30].mxu1  ;;  %v3608_v12 = vld [vmem:[%s4242_s24 + $0x44] ss:$16 sps:$4 sm:$0xff]  }
 0x647   : > { %v3360_v13 = vpop.f32.mrb[31].mxu0  ;;  %v3366_v14 = vpop.f32.mrb[31].mxu1  ;;  %3400 = vmatmul.mubr.msk.bf16.vlgmr.msra.gmra.mrb[40].mxu0 %vm951_vm1, %v1938_v10  ;;  %v3611_v52 = vld [vmem:[%s4242_s24 + $0x4c] ss:$16 sps:$4 sm:$0xff]   ;;  %v3606_v55 = vld [vmem:[%s4242_s24 + $0x40] ss:$16 sps:$4 sm:$0xff]  }
 0x648   : > { %2346 = vmatprep.mubr.bf16.mxu0 %v3953_v28  ;;  %2315 = vmatpush1.bf16.msra.mxu0 %v3594_v54  ;;  %v3609_v13 = vld [vmem:[%s4242_s24 + $0x48] ss:$16 sps:$4 sm:$0xff]   ;;  %v3614_v14 = vld [vmem:[%s4242_s24 + $0x64] ss:$16 sps:$4 sm:$0xff]  }
 0x649   : > { %2316 = vmatprep.subr.bf16.mxu0 %v3602_v63 }
 0x64c   : > { %v1756_v15 = vpop.f32.mrb[32].mxu0  ;;  %v1802_v16 = vpop.f32.mrb[32].mxu1  ;;  %2317 = vmatpush1.bf16.msra.mxu0 %v3600_v1  ;;  %v3647_v1 = vld [vmem:[%s4244_s3 + $0xc8] sm:$0xff]  }
 0x64d   : > { %v1997_v17 = vpack.c.bf16 %v1802_v16, %v1756_v15  ;;  %v3371_v18 = vpop.f32.mrb[33].mxu0  ;;  %v3377_v19 = vpop.f32.mrb[33].mxu1  ;;  %2318 = vmatprep.subr.bf16.mxu0 %v3608_v12  ;;  %v3617_v15 = vld [vmem:[%s4242_s24 + $0x6c] ss:$16 sps:$4 sm:$0xff]   ;;  %v3612_v16 = vld [vmem:[%s4242_s24 + $0x60] ss:$16 sps:$4 sm:$0xff]  }
 0x64e   : > { %v1759_v29 = vpop.f32.mrb[34].mxu0  ;;  %v1805_v8 = vpop.f32.mrb[34].mxu1  ;;  %v3620_v18 = vld [vmem:[%s4242_s24 + $0x84] ss:$16 sps:$4 sm:$0xff]   ;;  %v3623_v19 = vld [vmem:[%s4242_s24 + $0x8c] ss:$16 sps:$4 sm:$0xff]  }
 0x64f   : > { %v3372_v20 = vpop.f32.mrb[35].mxu0  ;;  %v3378_v22 = vpop.f32.mrb[35].mxu1  ;;  %3408 = vmatmul.mubr.msk.bf16.vlgmr.msra.gmra.mrb[40].mxu1 %vm951_vm1, %v1997_v17  ;;  %v3615_v17 = vld [vmem:[%s4242_s24 + $0x68] ss:$16 sps:$4 sm:$0xff]   ;;  %v3618_v29 = vld [vmem:[%s4242_s24 + $0x80] ss:$16 sps:$4 sm:$0xff]  }
 0x650   : > { %2389 = vmatprep.mubr.bf16.mxu1 %v3953_v28  ;;  %v2059_v28 = vrot.slane %v4320_v58, %v2058_v40  ;;  %2358 = vmatpush1.bf16.msra.mxu1 %v3597_v61  ;;  %v3621_v8 = vld [vmem:[%s4242_s24 + $0x88] ss:$16 sps:$4 sm:$0xff]   ;;  %v3626_v20 = vld [vmem:[%s4242_s24 + $0xa4] ss:$16 sps:$4 sm:$0xff]   ;;  %v3629_v22 = vld [vmem:[%s4242_s24 + $0xac] ss:$16 sps:$4 sm:$0xff]  }
 0x651   : > { %2359 = vmatprep.subr.bf16.mxu1 %v3605_v0  ;;  %2319 = vmatpush1.bf16.msra.mxu0 %v3606_v55  ;;  %v3644_v61 = vld [vmem:[%s4244_s3] sm:$0xff]   ;;  %v3646_v0 = vld [vmem:[%s4244_s3 + $0x48] sm:$0xff]   ;;  %v3657_v12 = vld [vmem:[%s4244_s3 + $0x98] sm:$0xff]  }
 0x652   : > { %2320 = vmatprep.subr.bf16.mxu0 %v3614_v14  ;;  %v3659_v55 = vld [vmem:[%s4244_s3 + $0xe0] sm:$0xff]  }
 0x653   : > { %v3661_v14 = vld [vmem:[%s4244_s3 + $0xa0] sm:$0xff]  }
 0x654   : > { %2360 = vmatpush1.bf16.msra.mxu1 %v3603_v2  ;;  %v3648_v2 = vld [vmem:[%s4244_s3 + $0x8] sm:$0xff]  }
 0x655   : > { %2361 = vmatprep.subr.bf16.mxu1 %v3611_v52  ;;  %2321 = vmatpush1.bf16.msra.mxu0 %v3612_v16  ;;  %v3658_v52 = vld [vmem:[%s4244_s3 + $0x60] sm:$0xff]   ;;  %v3663_v16 = vld [vmem:[%s4244_s3 + $0xe8] sm:$0xff]  }
 0x656   : > { %2322 = vmatprep.subr.bf16.mxu0 %v3620_v18  ;;  %v3665_v18 = vld [vmem:[%s4244_s3 + $0xa8] sm:$0xff]  }
 0x658   : > { %2362 = vmatpush1.bf16.msra.mxu1 %v3609_v13  ;;  %v3660_v13 = vld [vmem:[%s4244_s3 + $0x20] sm:$0xff]  }
 0x659   : > { %2363 = vmatprep.subr.bf16.mxu1 %v3617_v15  ;;  %2323 = vmatpush1.bf16.msra.mxu0 %v3618_v29  ;;  %v3662_v15 = vld [vmem:[%s4244_s3 + $0x68] sm:$0xff]   ;;  %v3667_v29 = vld [vmem:[%s4244_s3 + $0xf0] sm:$0xff]  }
 0x65a   : > { %2324 = vmatprep.subr.bf16.mxu0 %v3626_v20  ;;  %v3669_v20 = vld [vmem:[%s4244_s3 + $0xb0] sm:$0xff]  }
 0x65c   : > { %2364 = vmatpush1.bf16.msra.mxu1 %v3615_v17  ;;  %v3664_v17 = vld [vmem:[%s4244_s3 + $0x28] sm:$0xff]  }
 0x65d   : > { %2365 = vmatprep.subr.bf16.mxu1 %v3623_v19  ;;  %v3666_v19 = vld [vmem:[%s4244_s3 + $0x70] sm:$0xff]  }
 0x660   : > { %2366 = vmatpush1.bf16.msra.mxu1 %v3621_v8  ;;  %v3668_v8 = vld [vmem:[%s4244_s3 + $0x30] sm:$0xff]  }
 0x661   : > { %2367 = vmatprep.subr.bf16.mxu1 %v3629_v22  ;;  %v3670_v22 = vld [vmem:[%s4244_s3 + $0x78] sm:$0xff]  }
 0x6b3   : > { %v1931_v23 = vpop.f32.mrb[36].mxu1 }
 0x6b4   : > { %v3393_v24 = vpop.f32.mrb[37].mxu1 }
 0x6b5   : > { %v1934_v25 = vpop.f32.mrb[38].mxu1  ;;  %v3627_v24 = vld [vmem:[%s4242_s24 + $0xa8] ss:$16 sps:$4 sm:$0xff]  }
 0x6b6   : > { %v3394_v27 = vpop.f32.mrb[39].mxu1  ;;  %2368 = vmatpush1.bf16.msra.mxu1 %v3627_v24  ;;  %v3672_v24 = vld [vmem:[%s4244_s3 + $0x38] sm:$0xff]  }
 0x6b7   : > { %v3635_v27 = vld [vmem:[%s4242_s24 + $0xcc] ss:$16 sps:$4 sm:$0xff]  }
 0x6b8   : > { %2369 = vmatprep.subr.bf16.mxu1 %v3635_v27  ;;  %v2132_v27 = vld [vmem:[%s4260_s14] sm:$0xf] }
 0x710   : > { %v1875_v21 = vpop.f32.mrb[36].mxu0 }
 0x711   : > { %v1932_v30 = vadd.f32 %v1931_v23, %v1875_v21  ;;  %v3385_v31 = vpop.f32.mrb[37].mxu0  ;;  %v3624_v23 = vld [vmem:[%s4242_s24 + $0xa0] ss:$16 sps:$4 sm:$0xff]  }
 0x712   : > { %v1878_v26 = vpop.f32.mrb[38].mxu0  ;;  %2325 = vmatpush1.bf16.msra.mxu0 %v3624_v23  ;;  %v3630_v21 = vld [vmem:[%s4242_s24 + $0xc0] ss:$16 sps:$4 sm:$0xff]   ;;  %v3638_v31 = vld [vmem:[%s4242_s24 + $0xe4] ss:$16 sps:$4 sm:$0xff]   ;;  %v3671_v23 = vld [vmem:[%s4244_s3 + $0xf8] sm:$0xff]  }
 0x713   : > { %v1935_v32 = vadd.f32 %v1934_v25, %v1878_v26  ;;  %v3386_v33 = vpop.f32.mrb[39].mxu0  ;;  %v3632_v25 = vld [vmem:[%s4242_s24 + $0xc4] ss:$16 sps:$4 sm:$0xff]   ;;  %v3636_v26 = vld [vmem:[%s4242_s24 + $0xe0] ss:$16 sps:$4 sm:$0xff]  }
 0x714   : > { %2326 = vmatprep.subr.bf16.mxu0 %v3632_v25  ;;  %v3641_v33 = vld [vmem:[%s4242_s24 + $0xec] ss:$16 sps:$4 sm:$0xff]  }
 0x715   : > { %v3673_v25 = vld [vmem:[%s4244_s3 + $0xb8] sm:$0xff]  }
 0x716   : > { %2327 = vmatpush1.bf16.msra.mxu0 %v3630_v21  ;;  %v2137_v21 = vrot.slane %v2132_v27, %v849_v57 }
 0x717   : > { %2328 = vmatprep.subr.bf16.mxu0 %v3638_v31  ;;  %v2141_v31 = vrot.slane %v2132_v27, %v857_v59 }
 0x71a   : > { %v1988_v34 = vpop.f32.mrb[40].mxu0  ;;  %2329 = vmatpush1.bf16.msra.mxu0 %v3636_v26  ;;  %v2149_v26 = vrot.slane %v2132_v27, %v2058_v40 }
 0x71b   : > { %v1995_v35 = vadd.f32 %v1988_v34, %v1932_v30  ;;  %v3401_v36 = vpop.f32.mrb[41].mxu0  ;;  %v3633_v30 = vld [vmem:[%s4242_s24 + $0xc8] ss:$16 sps:$4 sm:$0xff]   ;;  %v3642_v34 = vld [vmem:[%s4244_s3 + $0x40] sm:$0xff]  }
 0x71c   : > { %v1991_v37 = vpop.f32.mrb[42].mxu0  ;;  %2370 = vmatpush1.bf16.msra.mxu1 %v3633_v30  ;;  %3219 = vmatprep.subr.bf16.mxu0 %v3642_v34  ;;  %v2145_v30 = vrot.slane %v2132_v27, %v863_v39 }
 0x71d   : > { %v1996_v41 = vadd.f32 %v1991_v37, %v1935_v32  ;;  %v3402_v38 = vpop.f32.mrb[43].mxu0  ;;  %v3639_v32 = vld [vmem:[%s4242_s24 + $0xe8] ss:$16 sps:$4 sm:$0xff]   ;;  %2371 = vmatprep.subr.bf16.mxu1 %v3641_v33  ;;  %s2833_s24 = sshll.u32 %s3959_s20, 4  ;;  %s2834_s24 = int_to_ptr.vmem [resolvable:$true] %s2833_s24 }
 0x71e   : > { %p3860_p13 = scmp.lt.s32.totalorder %s2834_s24, %s2834_s24 }
 0x720   : > { %2372 = vmatpush1.bf16.msra.mxu1 %v3639_v32 }
 0x722   : > { %v2047_v42 = vpop.f32.mrb[40].mxu1 }
 0x723   : > { %v2054_v43 = vadd.f32 %v2047_v42, %v1995_v35  ;;  %v3409_v44 = vpop.f32.mrb[41].mxu1  ;;  %v3643_v35 = vld [vmem:[%s4244_s3 + $0xc0] sm:$0xff]  }
 0x724   : > { %v2050_v45 = vpop.f32.mrb[42].mxu1  ;;  %3241 = vmatprep.subr.bf16.mxu1 %v3643_v35  ;;  %v4555_v44 = vld [vmem:[%s4255_s4] sm:$0xff] }
 0x725   : > { %v2060_v46 = vadd.f32 %v2059_v28, %v2054_v43  ;;  %v2055_v47 = vadd.f32 %v2050_v45, %v1996_v41  ;;  %v3410_v48 = vpop.f32.mrb[43].mxu1  ;;  %v2089_v43 = vsub.s32 4, %v4316_v56 }
 0x727   : > { %v2061_v49 = vadd.f32 %v2059_v28, %v2055_v47  ;;  %v2062_v51 = vadd.f32 %v3730_v50, %v2060_v46  ;;  %v2090_v45 = vrot.slane %v4555_v44, %v2089_v43  ;;  %v2095_v46 = vsub.s32 5, %v4316_v56 }
 0x729   : > { %2064 = vadd.xlane.f32.xlu1 %v2062_v51  ;;  %v2063_v58 = vadd.f32 %v3731_v53, %v2061_v49  ;;  %v2096_v53 = vrot.slane %v4555_v44, %v2095_v46 }
 0x72b   : > { %2066 = vadd.xlane.f32.xlu0 %v2063_v58 }
 0x7b6   : > { %v2065_v3 = vpop.xlane.xlu1 %2064 }
 0x7b7   : > { %v2069_v4 = vmul.f32 0.0078125, %v2065_v3  ;;  %v3649_v3 = vld [vmem:[%s4244_s3 + $0x88] sm:$0xff]  }
 0x7b8   : > { %v2067_v5 = vpop.xlane.xlu0 %2066 }
 0x7b9   : > { %v4519_v6 = vsub.f32 %v2062_v51, %v2069_v4  ;;  %v2070_v7 = vmul.f32 0.0078125, %v2067_v5  ;;  %v3650_v4 = vld [vmem:[%s4244_s3 + $0x50] sm:$0xff]  }
 0x7ba   : > { %v3651_v5 = vld [vmem:[%s4244_s3 + $0xd0] sm:$0xff]  }
 0x7bb   : > { %v4521_v9 = vsub.f32 %v2063_v58, %v2070_v7  ;;  %v2073_v10 = vmul.f32 %v4519_v6, %v4519_v6  ;;  %v3653_v7 = vld [vmem:[%s4244_s3 + $0x90] sm:$0xff]  }
 0x7bd   : > { %2075 = vadd.xlane.f32.xlu0 %v2073_v10  ;;  %v2074_v11 = vmul.f32 %v4521_v9, %v4521_v9  ;;  %v3655_v10 = vld [vmem:[%s4244_s3 + $0xd8] sm:$0xff]  }
 0x7bf   : > { %2077 = vadd.xlane.f32.xlu1 %v2074_v11  ;;  %v3656_v11 = vld [vmem:[%s4244_s3 + $0x18] sm:$0xff]  }
 0x84a   : > { %v2076_v36 = vpop.xlane.xlu0 %2075 }
 0x84b   : > { %v2079_v37 = vmul.f32 0.0078125, %v2076_v36 }
 0x84c   : > { %v2078_v41 = vpop.xlane.xlu1 %2077 }
 0x84d   : > { %v2081_v38 = vadd.f32 1e-05, %v2079_v37  ;;  %v2080_v28 = vmul.f32 0.0078125, %v2078_v41 }
 0x84f   : > { %3706 = vrsqrt.f32 %v2081_v38  ;;  %v2082_v42 = vadd.f32 1e-05, %v2080_v28 }
 0x851   : > { %3708 = vrsqrt.f32 %v2082_v42 }
 0x859   : > { %v3707_v47 = vpop.eup %3706 }
 0x85a   : > { %v2085_v48 = vmul.f32 %v3707_v47, %v4519_v6  ;;  %v3652_v6 = vld [vmem:[%s4244_s3 + $0x10] sm:$0xff]  }
 0x85b   : > { %v3709_v49 = vpop.eup %3708 }
 0x85c   : > { %v2086_v50 = vmul.f32 %v3709_v49, %v4521_v9  ;;  %v2091_v51 = vmul.f32 %v2090_v45, %v2085_v48  ;;  %v3654_v9 = vld [vmem:[%s4244_s3 + $0x58] sm:$0xff]   ;;  %s3853_s3 = scalar_lea.vmem %s2834_s24, 256 }
 0x85d   : > { %p3854_p8 = scmp.ne.s32.totalorder %s2834_s24, %s3853_s3  ;;  %p3861_p1 = scmp.lt.s32.totalorder %s3853_s3, %s3853_s3 }
 0x85e   : > { %v2092_v58 = vmul.f32 %v2090_v45, %v2086_v50  ;;  %v4562_v54 = vadd.f32 %v2096_v53, %v2091_v51 }
 0x85f   : > { %p3855_p0 = pnand %p3854_p8, %p3440_p6  ;;  %p3862_p11 = por %p3861_p1, %p3860_p13 }
 0x860   : > { %v4564_v60 = vadd.f32 %v2096_v53, %v2092_v58 }
 0x861   : > { %p3856_p5 = pneg %p3855_p0 }
 0x862   : > { %v2099_v63 = vpack.c.bf16 %v4564_v60, %v4562_v54 }
 0x863   : > { %p3863_p2 = pnand %p3862_p11, %p3856_p5 }
 0x864   : > { %2347 = vmatmul.mubr.bf16.vlgmr.msra.gmra.mrb[44].mxu0 %v2099_v63  ;;  %2390 = vmatmul.mubr.bf16.vlgmr.msra.gmra.mrb[44].mxu1 %v2099_v63 }
 0x865   : > { %3220 = vmatpush3.bf16.msra.mxu0 %v3644_v61  ;;  %3242 = vmatpush3.bf16.msra.mxu1 %v3645_v62 }
 0x866   : > { %3221 = vmatprep.subr.bf16.mxu0 %v3646_v0  ;;  %3243 = vmatprep.subr.bf16.mxu1 %v3647_v1 }
 0x869   : > { %3222 = vmatpush3.bf16.msra.mxu0 %v3648_v2  ;;  %3244 = vmatpush3.bf16.msra.mxu1 %v3649_v3 }
 0x86a   : > { %3223 = vmatprep.subr.bf16.mxu0 %v3650_v4  ;;  %3245 = vmatprep.subr.bf16.mxu1 %v3651_v5 }
 0x86d   : > { %3224 = vmatpush3.bf16.msra.mxu0 %v3652_v6  ;;  %3246 = vmatpush3.bf16.msra.mxu1 %v3653_v7 }
 0x86e   : > { %3225 = vmatprep.subr.bf16.mxu0 %v3654_v9  ;;  %3247 = vmatprep.subr.bf16.mxu1 %v3655_v10 }
 0x871   : > { %3226 = vmatpush3.bf16.msra.mxu0 %v3656_v11  ;;  %3248 = vmatpush3.bf16.msra.mxu1 %v3657_v12 }
 0x872   : > { %3227 = vmatprep.subr.bf16.mxu0 %v3658_v52  ;;  %3249 = vmatprep.subr.bf16.mxu1 %v3659_v55 }
 0x875   : > { %3228 = vmatpush3.bf16.msra.mxu0 %v3660_v13  ;;  %3250 = vmatpush3.bf16.msra.mxu1 %v3661_v14 }
 0x876   : > { %3229 = vmatprep.subr.bf16.mxu0 %v3662_v15  ;;  %3251 = vmatprep.subr.bf16.mxu1 %v3663_v16 }
 0x879   : > { %3230 = vmatpush3.bf16.msra.mxu0 %v3664_v17  ;;  %3252 = vmatpush3.bf16.msra.mxu1 %v3665_v18 }
 0x87a   : > { %3231 = vmatprep.subr.bf16.mxu0 %v3666_v19  ;;  %3253 = vmatprep.subr.bf16.mxu1 %v3667_v29 }
 0x87d   : > { %3232 = vmatpush3.bf16.msra.mxu0 %v3668_v8  ;;  %3254 = vmatpush3.bf16.msra.mxu1 %v3669_v20 }
 0x87e   : > { %3233 = vmatprep.subr.bf16.mxu0 %v3670_v22  ;;  %3255 = vmatprep.subr.bf16.mxu1 %v3671_v23 }
 0x881   : > { %3234 = vmatpush3.bf16.msra.mxu0 %v3672_v24  ;;  %3256 = vmatpush3.bf16.msra.mxu1 %v3673_v25 }
 0x937   : > { %v2348_v32 = vpop.f32.mrb[44].mxu0  ;;  %v2391_v33 = vpop.f32.mrb[44].mxu1 }
 0x938   : > { %v2349_v34 = vadd.f32 %v2348_v32, %v2137_v21  ;;  %v2392_v35 = vadd.f32 %v2391_v33, %v2145_v30  ;;  %v2350_v36 = vpop.f32.mrb[45].mxu0  ;;  %v2393_v37 = vpop.f32.mrb[45].mxu1  ;;  %v2510_v32 = vsub.s32 6, %v4316_v56 }
 0x939   : > { %v2351_v41 = vadd.f32 %v2350_v36, %v2141_v31  ;;  %v2394_v38 = vadd.f32 %v2393_v37, %v2149_v26  ;;  %v2352_v28 = vpop.f32.mrb[46].mxu0  ;;  %v2395_v42 = vpop.f32.mrb[46].mxu1 }
 0x93a   : > { %v2408_v57 = vmul.f32 0.70710677, %v2349_v34  ;;  %v2410_v43 = vmul.f32 0.70710677, %v2392_v35  ;;  %v2353_v46 = vadd.f32 %v2352_v28, %v2137_v21  ;;  %v2396_v59 = vadd.f32 %v2395_v42, %v2145_v30  ;;  %v2354_v47 = vpop.f32.mrb[47].mxu0  ;;  %v2397_v48 = vpop.f32.mrb[47].mxu1 }
 0x93b   : > { %v2409_v45 = vmul.f32 0.70710677, %v2351_v41  ;;  %v2411_v39 = vmul.f32 0.70710677, %v2394_v38  ;;  %v2355_v40 = vadd.f32 %v2354_v47, %v2141_v31  ;;  %v2398_v49 = vadd.f32 %v2397_v48, %v2149_v26 }
 0x93c   : > { %3710 = verf.f32 %v2408_v57  ;;  %v2412_v50 = vmul.f32 0.70710677, %v2353_v46  ;;  %v2414_v51 = vmul.f32 0.70710677, %v2396_v59  ;;  %v2400_v3 = vmul.f32 0.5, %v2349_v34 }
 0x93d   : > { %3712 = verf.f32 %v2410_v43  ;;  %v2413_v53 = vmul.f32 0.70710677, %v2355_v40  ;;  %v2415_v58 = vmul.f32 0.70710677, %v2398_v49  ;;  %v2402_v4 = vmul.f32 0.5, %v2392_v35 }
 0x93e   : > { %3714 = verf.f32 %v2409_v45  ;;  %v2401_v7 = vmul.f32 0.5, %v2351_v41  ;;  %v2404_v10 = vmul.f32 0.5, %v2353_v46  ;;  %v2403_v52 = vmul.f32 0.5, %v2394_v38 }
 0x93f   : > { %3716 = verf.f32 %v2411_v39  ;;  %v2406_v13 = vmul.f32 0.5, %v2396_v59  ;;  %v2405_v18 = vmul.f32 0.5, %v2355_v40  ;;  %v2407_v20 = vmul.f32 0.5, %v2398_v49 }
 0x940   : > { %3718 = verf.f32 %v2412_v50  ;;  %v2511_v34 = vrot.slane %v4555_v44, %v2510_v32 }
 0x941   : > { %3720 = verf.f32 %v2414_v51 }
 0x942   : > { %3722 = verf.f32 %v2413_v53 }
 0x943   : > { %3724 = verf.f32 %v2415_v58 }
 0x946   : > { %v3711_v61 = vpop.eup %3710 }
 0x947   : > { %v3713_v62 = vpop.eup %3712  ;;  %v2424_v1 = vadd.f32 1.0, %v3711_v61 }
 0x948   : > { %v3715_v63 = vpop.eup %3714  ;;  %v2426_v5 = vadd.f32 1.0, %v3713_v62 }
 0x949   : > { %v3717_v0 = vpop.eup %3716  ;;  %v2425_v9 = vadd.f32 1.0, %v3715_v63  ;;  %v2432_v16 = vmul.f32 %v2424_v1, %v2400_v3 }
 0x94a   : > { %v3719_v2 = vpop.eup %3718  ;;  %v2427_v55 = vadd.f32 1.0, %v3717_v0  ;;  %v2434_v29 = vmul.f32 %v2426_v5, %v2402_v4  ;;  %v2812_v5 = vsub.s32 7, %v4316_v56 }
 0x94b   : > { %v3721_v6 = vpop.eup %3720  ;;  %v2428_v11 = vadd.f32 1.0, %v3719_v2  ;;  %v2433_v23 = vmul.f32 %v2425_v9, %v2401_v7 }
 0x94c   : > { %v3723_v12 = vpop.eup %3722  ;;  %v2430_v14 = vadd.f32 1.0, %v3721_v6  ;;  %v2435_v27 = vmul.f32 %v2427_v55, %v2403_v52  ;;  %v2813_v6 = vrot.slane %v4555_v44, %v2812_v5 }
 0x94d   : > { %v3725_v15 = vpop.eup %3724  ;;  %v2436_v17 = vmul.f32 %v2428_v11, %v2404_v10  ;;  %v2429_v19 = vadd.f32 1.0, %v3723_v12  ;;  %v3157_v11 = vld [vmem:[%s4255_s4 + $0x8] ss:$0 sm:$0xff] }
 0x94e   : > { %v2438_v8 = vmul.f32 %v2430_v14, %v2406_v13  ;;  %v2431_v22 = vadd.f32 1.0, %v3725_v15 }
 0x94f   : > { %v2440_v24 = vpack.c.bf16 %v2436_v17, %v2432_v16  ;;  %v2437_v25 = vmul.f32 %v2429_v19, %v2405_v18 }
 0x950   : > { %v2442_v21 = vpack.c.bf16 %v2438_v8, %v2434_v29  ;;  %v2439_v30 = vmul.f32 %v2431_v22, %v2407_v20 }
 0x951   : > { %v2441_v31 = vpack.c.bf16 %v2437_v25, %v2433_v23 }
 0x952   : > { %v2443_v26 = vpack.c.bf16 %v2439_v30, %v2435_v27 }
 0x953   : > { %2736 = vmatprep.mubr.bf16.mxu0 %v2441_v31 }
 0x954   : > { %2777 = vmatprep.mubr.bf16.mxu1 %v2443_v26  ;;  %2737 = vmatmul.mubr.bf16.vlgmr.msra.gmra.mrb[48].mxu0 %v2440_v24 }
 0x955   : > { %2778 = vmatmul.mubr.bf16.vlgmr.msra.gmra.mrb[48].mxu1 %v2442_v21 }
 0xa27   : > { %v3235_v33 = vpop.f32.mrb[48].mxu0 }
 0xa28   : > { %v3257_v35 = vpop.f32.mrb[48].mxu1  ;;  %v3236_v36 = vpop.f32.mrb[49].mxu0 }
 0xa29   : > { %v3237_v37 = vadd.f32 %v3236_v36, %v3235_v33  ;;  %v3258_v41 = vpop.f32.mrb[49].mxu1  ;;  %v3238_v38 = vpop.f32.mrb[50].mxu0 }
 0xa2a   : > { %v3259_v28 = vadd.f32 %v3258_v41, %v3257_v35  ;;  %v3260_v42 = vpop.f32.mrb[50].mxu1  ;;  %v3239_v57 = vpop.f32.mrb[51].mxu0 }
 0xa2b   : > { %v2739_v43 = vadd.f32 %v3237_v37, %v2511_v34  ;;  %v3240_v45 = vadd.f32 %v3239_v57, %v3238_v38  ;;  %v3261_v39 = vpop.f32.mrb[51].mxu1 }
 0xa2c   : > { %v3262_v46 = vadd.f32 %v3261_v39, %v3260_v42 }
 0xa2d   : > { %v2780_v59 = vadd.f32 %v3259_v28, %v2739_v43  ;;  %v2742_v47 = vadd.f32 %v3240_v45, %v2511_v34 }
 0xa2f   : > { %v2783_v48 = vadd.f32 %v3262_v46, %v2742_v47  ;;  %v2786_v40 = vadd.f32 %v2780_v59, %v4562_v54 }
 0xa31   : > { %2788 = vadd.xlane.f32.xlu0 %v2786_v40  ;;  %v2787_v49 = vadd.f32 %v2783_v48, %v4564_v60 }
 0xa33   : > { %2790 = vadd.xlane.f32.xlu1 %v2787_v49 }
 0xabe   : > { %v2789_v50 = vpop.xlane.xlu0 %2788 }
 0xabf   : > { %v2792_v51 = vmul.f32 0.0078125, %v2789_v50 }
 0xac0   : > { %v2791_v53 = vpop.xlane.xlu1 %2790 }
 0xac1   : > { %v2794_v58 = vsub.f32 %v2786_v40, %v2792_v51  ;;  %v2793_v61 = vmul.f32 0.0078125, %v2791_v53 }
 0xac3   : > { %v2795_v62 = vsub.f32 %v2787_v49, %v2793_v61  ;;  %v2796_v63 = vmul.f32 %v2794_v58, %v2794_v58 }
 0xac5   : > { %2798 = vadd.xlane.f32.xlu0 %v2796_v63  ;;  %v2797_v0 = vmul.f32 %v2795_v62, %v2795_v62 }
 0xac7   : > { %2800 = vadd.xlane.f32.xlu1 %v2797_v0 }
 0xb52   : > { %v2799_v1 = vpop.xlane.xlu0 %2798 }
 0xb53   : > { %v2802_v2 = vmul.f32 0.0078125, %v2799_v1 }
 0xb54   : > { %v2801_v3 = vpop.xlane.xlu1 %2800 }
 0xb55   : > { %v2804_v4 = vadd.f32 1e-05, %v2802_v2  ;;  %v2803_v54 = vmul.f32 0.0078125, %v2801_v3 }
 0xb57   : > { %3726 = vrsqrt.f32 %v2804_v4  ;;  %v2805_v60 = vadd.f32 1e-05, %v2803_v54 }
 0xb59   : > { %3728 = vrsqrt.f32 %v2805_v60 }
 0xb61   : > { %v3727_v7 = vpop.eup %3726 }
 0xb62   : > { %v2808_v9 = vmul.f32 %v3727_v7, %v2794_v58 }
 0xb63   : > { %v3729_v10 = vpop.eup %3728 }
 0xb64   : > { %v2809_v12 = vmul.f32 %v3729_v10, %v2795_v62  ;;  %v2814_v52 = vmul.f32 %v2813_v6, %v2808_v9 }
 0xb66   : > { %v2815_v55 = vmul.f32 %v2813_v6, %v2809_v12  ;;  %v2820_v13 = vadd.f32 %v3157_v11, %v2814_v52 }
 0xb68   : > { %v2821_v14 = vadd.f32 %v3157_v11, %v2815_v55  ;;  %2822 = vst [vmem:[#allocation10] sm:$0xff] %v2820_v13 }
 0xb6a   : > { %2823 = vst [vmem:[#allocation10 + $0x8] sm:$0xff] %v2821_v14 }
 0xb6b   : > { %3866 = shalt.err (!%p3863_p2)
}
 0xb6c   : > { %s3867_s19 = scalar_lea.hbm %s4664_s9, 256 }
 0xb6d   : > { %p3868_p10 = scmp.ne.s32.totalorder %s4664_s9, %s3867_s19  ;;  %p3873_p7 = scmp.lt.u32.totalorder %s3867_s19, %s4664_s9 }
 0xb6f   : > { %p3869_p3 = pnand %p3868_p10, %p3440_p6 }
 0xb71   : > { %p3870_p12 = pneg %p3869_p3 }
 0xb73   : > { %p3875_p9 = pnand %p3873_p7, %p3870_p12 }
 0xb75   : > { %3878 = shalt.err (!%p3875_p9)
}
 0xb76   : > { %s3960_s29 = smov 128   ;;  %s3961_s23 = smov 8  }
 0xb77   : > { %3423 = dma.vmem_to_hbm [thread:$0]  (%p3440_p6), %s2834_s24, 256, %s4664_s9, [#allocation4], %s3960_s29, %s3960_s29, %s3961_s23  }
 0xb78   : > { %3916 = dma.done.wait (%p3440_p6), [#allocation4], 256  }
 0xb79   : > { %3918 = vsyncadd (%p3440_p6), [#allocation4], 4294967040 }
 0xb7a PF: > { %s4688_s11 = sld [smem:[#allocation16_spill]]  ;;  %s4689_s18 = sld [smem:[#allocation15_spill]] }
 0xb7b   : > { %s4691_s27 = sld [smem:[#allocation17_spill]]  ;;  %s4692_s30 = smov %s3925_s10 }
 0xb7c   : > { %s4694_s12 = smov %s3937_s13 }
 0xb80   : > { %s29_s14 = sadd.s32 1, %s4688_s11   ;;  %s4690_s11 = sld [smem:[#allocation18_spill]] }
 0xb81   : > { %p26_p4 = scmp.ge.s32.totalorder %s29_s14, 4   ;;  %s4693_s10 = smov %s4689_s18 }
 0xb82   : > { %s4695_s13 = smov %s4691_s27 }
 0xb83   :  { %28 = sbr.rel (!%p26_p4) target bundleno = 12 (0xc), region = 147 }
 0xb8a   :  { %2849 = vsyncpa [#allocation3], 1 }
 0xb8b   :  { %2851 = vsyncpa [#allocation3 + $0x1], 1 }
 0xb8c   :  { %2852 = vsyncpa [#allocation6], 1 }
 0xb8d   :  { %2854 = vsyncpa [#allocation6 + $0x1], 1 }
 0xb8e   :  { %2855 = vsyncpa [#allocation9], 1 }
 0xb8f   :  { %2857 = vsyncpa [#allocation9 + $0x1], 1 }
 0xb90   :  { %2858 = vsyncpa [#allocation4], 1 }
 0xb91   :  { %2860 = vsyncpa [#allocation4 + $0x1], 1 }

</bundles_post_ra>
